<compile_context>
chip_gen: v5e
topology: v5e:2x2
jax: 0.10.0
libtpu: 0.0.40
codegen_flags: <defaults>
</compile_context>

<pallas_src>
import functools

import jax
import jax.numpy as jnp
from jax.experimental import pallas as pl
from jax.experimental.pallas import tpu as pltpu

# ----------------- synthetic (small) T5-style config -----------------
D_MODEL = 32
N_HEADS = 4
D_KV = 8                    # d_model == n_heads * d_kv
D_FF = 64
FEAT_DIM = 512              # fixed in VisualEmbedding.__init__
POS_DIM = 4                 # config.pos_dim
N_IMAGES = 2                # config.n_images
VOCAB = 100                 # obj_order_embedding.num_embeddings
NUM_BUCKETS = 32            # relative_attention_num_buckets
MAX_DIST = 128              # relative_attention_max_distance
EPS = 1e-6                  # layer_norm_epsilon
NUM_BLOCKS = 2              # VStack builds exactly 2 T5Blocks
# config flags: individual_vis_layer_norm=True, use_vis_layer_norm=True,
# use_vis_order_embedding=True, additional_visual_embedding_layers=0,
# dropout_rate=0.0 (every nn.Dropout is the identity; eval semantics).


# ----------------- the single fused kernel -----------------
def _fused_visual_embedding_kernel(
    feats_ref, pos5_ref, order_ref, bias_ref,
    feat_w_ref, feat_b_ref, feat_ln_ref,
    pos_w_ref, pos_b_ref, pos_ln_ref,
    sa_ln_ref, wqkv_ref, wo_ref, ff_ln_ref, wi_ref, wo_ff_ref,
    final_ln_ref,
    out_ref,
    *, eps, n_blocks, batch, seq, n_heads, d_kv,
):
    f32 = jnp.float32

    def rms(x, w):
        # T5LayerNorm: no mean subtraction, no bias
        var = jnp.mean(x * x, axis=-1, keepdims=True)
        return x * jax.lax.rsqrt(var + eps) * w

    # ---- visual embedding: feat Linear+LN, pos Linear+LN, + order embeddings ----
    fe = jnp.dot(feats_ref[...], feat_w_ref[...], preferred_element_type=f32) + feat_b_ref[...]
    fe = rms(fe, feat_ln_ref[...])
    pe = jnp.dot(pos5_ref[...], pos_w_ref[...], preferred_element_type=f32) + pos_b_ref[...]
    pe = rms(pe, pos_ln_ref[...])
    h = fe + pe + order_ref[...]                                   # [B*N, D]

    d_model = h.shape[-1]

    # ---- 2 T5 blocks (dropout(rate=0) = identity everywhere) ----
    for blk in range(n_blocks):
        # self-attention sub-layer (pre-norm, residual)
        normed = rms(h, sa_ln_ref[blk])
        qkv = jnp.dot(normed, wqkv_ref[blk], preferred_element_type=f32)   # [B*N, 3*H*dkv]
        wo = wo_ref[blk]                                                   # [H*dkv, D]
        attn_rows = []
        for b in range(batch):
            r0 = b * seq
            out_b = jnp.zeros((seq, d_model), f32)
            for hh in range(n_heads):
                c = hh * d_kv
                q = qkv[r0:r0 + seq, c:c + d_kv]
                k = qkv[r0:r0 + seq, n_heads * d_kv + c:n_heads * d_kv + c + d_kv]
                v = qkv[r0:r0 + seq, 2 * n_heads * d_kv + c:2 * n_heads * d_kv + c + d_kv]
                # T5 attention: no 1/sqrt(d) scaling; scores = q @ k^T (trans_b form)
                s = jax.lax.dot_general(q, k, (((1,), (1,)), ((), ())),
                                        preferred_element_type=f32)
                s = s + bias_ref[hh]
                s = s - jnp.max(s, axis=-1, keepdims=True)
                p = jnp.exp(s)
                p = p * pl.reciprocal(jnp.sum(p, axis=-1, keepdims=True), approx=True)
                ctx = jnp.dot(p, v, preferred_element_type=f32)            # [N, dkv]
                # fold this head's slice of the output projection (avoids reassembly)
                out_b = out_b + jnp.dot(ctx, wo[c:c + d_kv, :], preferred_element_type=f32)
            attn_rows.append(out_b)
        h = h + jnp.concatenate(attn_rows, axis=0)                         # residual

        # feed-forward sub-layer (pre-norm, ReLU, residual)
        normed = rms(h, ff_ln_ref[blk])
        ff = jnp.dot(normed, wi_ref[blk], preferred_element_type=f32)
        ff = jnp.maximum(ff, 0.0)
        ff = jnp.dot(ff, wo_ff_ref[blk], preferred_element_type=f32)
        h = h + ff

    # final_layer_norm (+ identity dropout)
    out_ref[...] = rms(h, final_ln_ref[...])


# ----------------- plain-JAX glue (gathers / bucketing; no clean Pallas equivalent) ----
def _relative_position_bucket(rel, num_buckets, max_distance):
    # bidirectional (encoder)
    num_buckets = num_buckets // 2
    buckets = (rel > 0).astype(jnp.int32) * num_buckets
    n = jnp.abs(rel)
    max_exact = num_buckets // 2
    is_small = n < max_exact
    n_f = jnp.maximum(n, 1).astype(jnp.float32)
    val_large = max_exact + (
        jnp.log(n_f / max_exact)
        / jnp.log(max_distance / max_exact)
        * (num_buckets - max_exact)
    ).astype(jnp.int32)
    val_large = jnp.minimum(val_large, num_buckets - 1)
    buckets = buckets + jnp.where(is_small, n, val_large)
    return buckets


def compute_position_bias(rel_bias_table, N):
    """Depends only on N and the table -> compute once and pass in."""
    ctx = jnp.arange(N)[:, None]
    mem = jnp.arange(N)[None, :]
    rp = mem - ctx
    buckets = _relative_position_bucket(rp, NUM_BUCKETS, MAX_DIST)
    values = rel_bias_table[buckets]                      # [N, N, H]
    return jnp.transpose(values, (2, 0, 1))               # [H, N, N]
    # extended attention mask is all-zero (attention_mask of ones) -> nothing to add


# ----------------- forward -----------------
def visual_embedding_forward(params, feats, pos, position_bias=None):
    B, N, _ = feats.shape
    assert pos.shape == (B, N, 4)

    if position_bias is None:
        position_bias = compute_position_bias(params["rel_bias"], N)       # [H, N, N]

    # get_area + concat -> [B*N, 5]
    height = pos[:, :, 3] - pos[:, :, 1]
    width = pos[:, :, 2] - pos[:, :, 0]
    area = (height * width)[:, :, None]
    pos5 = jnp.concatenate([pos, area], axis=2).reshape(B * N, POS_DIM + 1)

    # order embeddings with default ids (forward() with ids=None): tiny gathers
    img_ids = jnp.zeros((N,), jnp.int32)
    img_emb = params["img_order_emb"][img_ids]                             # [N, D]
    obj_ids = VOCAB - jnp.arange(N, dtype=jnp.int32) - 1
    obj_emb = params["obj_order_emb"][obj_ids]                             # [N, D]
    order2d = jnp.tile(img_emb + obj_emb, (B, 1))                          # [B*N, D] (2 KB)

    feats2d = feats.reshape(B * N, FEAT_DIM)

    kernel = functools.partial(
        _fused_visual_embedding_kernel,
        eps=EPS, n_blocks=NUM_BLOCKS, batch=B, seq=N, n_heads=N_HEADS, d_kv=D_KV,
    )

    def full(shape):
        nd = len(shape)
        return pl.BlockSpec(shape, lambda i, _nd=nd: (0,) * _nd)

    inputs = (
        feats2d, pos5, order2d, position_bias,
        params["feat_w"], params["feat_b"], params["feat_ln"],
        params["pos_w"], params["pos_b"], params["pos_ln"],
        params["sa_ln"], params["wqkv"], params["wo"],
        params["ff_ln"], params["wi"], params["wo_ff"],
        params["final_ln"],
    )
    out = pl.pallas_call(
        kernel,
        out_shape=jax.ShapeDtypeStruct((B * N, D_MODEL), jnp.float32),
        grid=(1,),
        in_specs=[full(x.shape) for x in inputs],
        out_specs=full((B * N, D_MODEL)),
        compiler_params=pltpu.CompilerParams(dimension_semantics=("arbitrary",)),
    )(*inputs)
    return out.reshape(B, N, D_MODEL)


# ----------------- deterministic parameter init -----------------
def init_params(key):
    ks = list(jax.random.split(key, 24))

    def nrm(k, shape):
        return (0.02 * jax.random.normal(k, shape)).astype(jnp.float32)

    params = {
        "feat_w": nrm(ks[0], (FEAT_DIM, D_MODEL)),
        "feat_b": nrm(ks[1], (1, D_MODEL)),
        "feat_ln": jnp.ones((1, D_MODEL), jnp.float32),
        "pos_w": nrm(ks[2], (POS_DIM + 1, D_MODEL)),
        "pos_b": nrm(ks[3], (1, D_MODEL)),
        "pos_ln": jnp.ones((1, D_MODEL), jnp.float32),
        "img_order_emb": nrm(ks[4], (N_IMAGES, D_MODEL)),
        "obj_order_emb": nrm(ks[5], (VOCAB, D_MODEL)),
        "rel_bias": nrm(ks[6], (NUM_BUCKETS, N_HEADS)),
        "final_ln": jnp.ones((1, D_MODEL), jnp.float32),
    }
    idx = 7
    sa_ln, wqkv, wo, ff_ln, wi, wo_ff = [], [], [], [], [], []
    for _ in range(NUM_BLOCKS):
        wq = nrm(ks[idx + 0], (D_MODEL, N_HEADS * D_KV))
        wk = nrm(ks[idx + 1], (D_MODEL, N_HEADS * D_KV))
        wv = nrm(ks[idx + 2], (D_MODEL, N_HEADS * D_KV))
        sa_ln.append(jnp.ones((1, D_MODEL), jnp.float32))
        wqkv.append(jnp.concatenate([wq, wk, wv], axis=1))       # fused QKV weight
        wo.append(nrm(ks[idx + 3], (N_HEADS * D_KV, D_MODEL)))
        ff_ln.append(jnp.ones((1, D_MODEL), jnp.float32))
        wi.append(nrm(ks[idx + 4], (D_MODEL, D_FF)))
        wo_ff.append(nrm(ks[idx + 5], (D_FF, D_MODEL)))
        idx += 6
    params["sa_ln"] = jnp.stack(sa_ln)       # [2, 1, D]
    params["wqkv"] = jnp.stack(wqkv)         # [2, D, 3*H*dkv]
    params["wo"] = jnp.stack(wo)             # [2, H*dkv, D]
    params["ff_ln"] = jnp.stack(ff_ln)       # [2, 1, D]
    params["wi"] = jnp.stack(wi)             # [2, D, F]
    params["wo_ff"] = jnp.stack(wo_ff)       # [2, F, D]
    return params


if __name__ == "__main__":
    key = jax.random.PRNGKey(0)
    pkey, fkey, poskey = jax.random.split(key, 3)
    params = init_params(pkey)

    B, N = 2, 8
    feats = jax.random.normal(fkey, (B, N, FEAT_DIM), jnp.float32)
    pos = jax.random.uniform(poskey, (B, N, 4), jnp.float32)

    # position bias is a function of (N, table) only -> hoisted out of the forward
    position_bias = compute_position_bias(params["rel_bias"], N)

    fwd = jax.jit(visual_embedding_forward)
    out = fwd(params, feats, pos, position_bias)
    out = jax.block_until_ready(out)
    assert out.shape == (B, N, D_MODEL) and out.dtype == jnp.float32
    print("KERNEL_OK")
</pallas_src>

<mosaic_0001>
module attributes {stable_mosaic.version = 11 : i64} {
  func.func @_fused_visual_embedding_kernel(%arg0: i32, %arg1: memref<16x512xf32, #tpu.memory_space<vmem>>, %arg2: memref<16x5xf32, #tpu.memory_space<vmem>>, %arg3: memref<16x32xf32, #tpu.memory_space<vmem>>, %arg4: memref<4x8x8xf32, #tpu.memory_space<vmem>>, %arg5: memref<512x32xf32, #tpu.memory_space<vmem>>, %arg6: memref<1x32xf32, #tpu.memory_space<vmem>>, %arg7: memref<1x32xf32, #tpu.memory_space<vmem>>, %arg8: memref<5x32xf32, #tpu.memory_space<vmem>>, %arg9: memref<1x32xf32, #tpu.memory_space<vmem>>, %arg10: memref<1x32xf32, #tpu.memory_space<vmem>>, %arg11: memref<2x1x32xf32, #tpu.memory_space<vmem>>, %arg12: memref<2x32x96xf32, #tpu.memory_space<vmem>>, %arg13: memref<2x32x32xf32, #tpu.memory_space<vmem>>, %arg14: memref<2x1x32xf32, #tpu.memory_space<vmem>>, %arg15: memref<2x32x64xf32, #tpu.memory_space<vmem>>, %arg16: memref<2x64x32xf32, #tpu.memory_space<vmem>>, %arg17: memref<1x32xf32, #tpu.memory_space<vmem>>, %arg18: memref<16x32xf32, #tpu.memory_space<vmem>>) attributes {dimension_semantics = [#tpu.dimension_semantics<arbitrary>], iteration_bounds = array<i64: 1>, scalar_prefetch = 0 : i64, scratch_operands = 0 : i64, tpu.core_type = #tpu.core_type<tc>, window_params = [{pipeline_mode = #tpu.pipeline_mode<synchronous>, transform_indices = @transform_0, window_bounds = array<i64: 16, 512>}, {pipeline_mode = #tpu.pipeline_mode<synchronous>, transform_indices = @transform_1, window_bounds = array<i64: 16, 5>}, {pipeline_mode = #tpu.pipeline_mode<synchronous>, transform_indices = @transform_2, window_bounds = array<i64: 16, 32>}, {pipeline_mode = #tpu.pipeline_mode<synchronous>, transform_indices = @transform_3, window_bounds = array<i64: 4, 8, 8>}, {pipeline_mode = #tpu.pipeline_mode<synchronous>, transform_indices = @transform_4, window_bounds = array<i64: 512, 32>}, {pipeline_mode = #tpu.pipeline_mode<synchronous>, transform_indices = @transform_5, window_bounds = array<i64: 1, 32>}, {pipeline_mode = #tpu.pipeline_mode<synchronous>, transform_indices = @transform_6, window_bounds = array<i64: 1, 32>}, {pipeline_mode = #tpu.pipeline_mode<synchronous>, transform_indices = @transform_7, window_bounds = array<i64: 5, 32>}, {pipeline_mode = #tpu.pipeline_mode<synchronous>, transform_indices = @transform_8, window_bounds = array<i64: 1, 32>}, {pipeline_mode = #tpu.pipeline_mode<synchronous>, transform_indices = @transform_9, window_bounds = array<i64: 1, 32>}, {pipeline_mode = #tpu.pipeline_mode<synchronous>, transform_indices = @transform_10, window_bounds = array<i64: 2, 1, 32>}, {pipeline_mode = #tpu.pipeline_mode<synchronous>, transform_indices = @transform_11, window_bounds = array<i64: 2, 32, 96>}, {pipeline_mode = #tpu.pipeline_mode<synchronous>, transform_indices = @transform_12, window_bounds = array<i64: 2, 32, 32>}, {pipeline_mode = #tpu.pipeline_mode<synchronous>, transform_indices = @transform_13, window_bounds = array<i64: 2, 1, 32>}, {pipeline_mode = #tpu.pipeline_mode<synchronous>, transform_indices = @transform_14, window_bounds = array<i64: 2, 32, 64>}, {pipeline_mode = #tpu.pipeline_mode<synchronous>, transform_indices = @transform_15, window_bounds = array<i64: 2, 64, 32>}, {pipeline_mode = #tpu.pipeline_mode<synchronous>, transform_indices = @transform_16, window_bounds = array<i64: 1, 32>}, {pipeline_mode = #tpu.pipeline_mode<synchronous>, transform_indices = @transform_17, window_bounds = array<i64: 16, 32>}]} {
    %c0 = arith.constant 0 : index
    %c0_0 = arith.constant 0 : index
    %0 = vector.load %arg1[%c0, %c0_0] : memref<16x512xf32, #tpu.memory_space<vmem>>, vector<16x512xf32>
    %c0_1 = arith.constant 0 : index
    %c0_2 = arith.constant 0 : index
    %1 = vector.load %arg5[%c0_1, %c0_2] : memref<512x32xf32, #tpu.memory_space<vmem>>, vector<512x32xf32>
    %cst = arith.constant dense<0.000000e+00> : vector<16x32xf32>
    %2 = tpu.matmul %0, %1, %cst {dimension_numbers = #tpu.dot_dimension_numbers<[1], [0], [0], [1], [0, 0, 1, 1], [], []>} : vector<16x512xf32>, vector<512x32xf32>, vector<16x32xf32> -> vector<16x32xf32>
    %c0_3 = arith.constant 0 : index
    %c0_4 = arith.constant 0 : index
    %3 = vector.load %arg6[%c0_3, %c0_4] : memref<1x32xf32, #tpu.memory_space<vmem>>, vector<1x32xf32>
    %4 = vector.broadcast %3 : vector<1x32xf32> to vector<16x32xf32>
    %5 = arith.addf %2, %4 : vector<16x32xf32>
    %c0_5 = arith.constant 0 : index
    %c0_6 = arith.constant 0 : index
    %6 = vector.load %arg7[%c0_5, %c0_6] : memref<1x32xf32, #tpu.memory_space<vmem>>, vector<1x32xf32>
    %7 = arith.mulf %5, %5 : vector<16x32xf32>
    %cst_7 = arith.constant dense<0.000000e+00> : vector<16xf32>
    %8 = vector.multi_reduction <add>, %7, %cst_7 [1] : vector<16x32xf32> to vector<16xf32>
    %9 = vector.shape_cast %8 : vector<16xf32> to vector<16x1xf32>
    %cst_8 = arith.constant 3.200000e+01 : f32
    %10 = vector.broadcast %cst_8 : f32 to vector<16x1xf32>
    %11 = arith.divf %9, %10 : vector<16x1xf32>
    %cst_9 = arith.constant 9.99999997E-7 : f32
    %12 = vector.broadcast %cst_9 : f32 to vector<16x1xf32>
    %13 = arith.addf %11, %12 : vector<16x1xf32>
    %14 = math.rsqrt %13 : vector<16x1xf32>
    %15 = vector.broadcast %14 : vector<16x1xf32> to vector<16x32xf32>
    %16 = arith.mulf %5, %15 : vector<16x32xf32>
    %17 = vector.broadcast %6 : vector<1x32xf32> to vector<16x32xf32>
    %18 = arith.mulf %16, %17 : vector<16x32xf32>
    %c0_10 = arith.constant 0 : index
    %c0_11 = arith.constant 0 : index
    %19 = vector.load %arg2[%c0_10, %c0_11] : memref<16x5xf32, #tpu.memory_space<vmem>>, vector<16x5xf32>
    %c0_12 = arith.constant 0 : index
    %c0_13 = arith.constant 0 : index
    %20 = vector.load %arg8[%c0_12, %c0_13] : memref<5x32xf32, #tpu.memory_space<vmem>>, vector<5x32xf32>
    %cst_14 = arith.constant dense<0.000000e+00> : vector<16x32xf32>
    %21 = tpu.matmul %19, %20, %cst_14 {dimension_numbers = #tpu.dot_dimension_numbers<[1], [0], [0], [1], [0, 0, 1, 1], [], []>} : vector<16x5xf32>, vector<5x32xf32>, vector<16x32xf32> -> vector<16x32xf32>
    %c0_15 = arith.constant 0 : index
    %c0_16 = arith.constant 0 : index
    %22 = vector.load %arg9[%c0_15, %c0_16] : memref<1x32xf32, #tpu.memory_space<vmem>>, vector<1x32xf32>
    %23 = vector.broadcast %22 : vector<1x32xf32> to vector<16x32xf32>
    %24 = arith.addf %21, %23 : vector<16x32xf32>
    %c0_17 = arith.constant 0 : index
    %c0_18 = arith.constant 0 : index
    %25 = vector.load %arg10[%c0_17, %c0_18] : memref<1x32xf32, #tpu.memory_space<vmem>>, vector<1x32xf32>
    %26 = arith.mulf %24, %24 : vector<16x32xf32>
    %cst_19 = arith.constant dense<0.000000e+00> : vector<16xf32>
    %27 = vector.multi_reduction <add>, %26, %cst_19 [1] : vector<16x32xf32> to vector<16xf32>
    %28 = vector.shape_cast %27 : vector<16xf32> to vector<16x1xf32>
    %cst_20 = arith.constant 3.200000e+01 : f32
    %29 = vector.broadcast %cst_20 : f32 to vector<16x1xf32>
    %30 = arith.divf %28, %29 : vector<16x1xf32>
    %cst_21 = arith.constant 9.99999997E-7 : f32
    %31 = vector.broadcast %cst_21 : f32 to vector<16x1xf32>
    %32 = arith.addf %30, %31 : vector<16x1xf32>
    %33 = math.rsqrt %32 : vector<16x1xf32>
    %34 = vector.broadcast %33 : vector<16x1xf32> to vector<16x32xf32>
    %35 = arith.mulf %24, %34 : vector<16x32xf32>
    %36 = vector.broadcast %25 : vector<1x32xf32> to vector<16x32xf32>
    %37 = arith.mulf %35, %36 : vector<16x32xf32>
    %38 = arith.addf %18, %37 : vector<16x32xf32>
    %c0_22 = arith.constant 0 : index
    %c0_23 = arith.constant 0 : index
    %39 = vector.load %arg3[%c0_22, %c0_23] : memref<16x32xf32, #tpu.memory_space<vmem>>, vector<16x32xf32>
    %40 = arith.addf %38, %39 : vector<16x32xf32>
    %c0_24 = arith.constant 0 : index
    %c0_25 = arith.constant 0 : index
    %c0_26 = arith.constant 0 : index
    %41 = vector.load %arg11[%c0_24, %c0_25, %c0_26] : memref<2x1x32xf32, #tpu.memory_space<vmem>>, vector<1x1x32xf32>
    %42 = vector.shape_cast %41 : vector<1x1x32xf32> to vector<1x32xf32>
    %43 = arith.mulf %40, %40 : vector<16x32xf32>
    %cst_27 = arith.constant dense<0.000000e+00> : vector<16xf32>
    %44 = vector.multi_reduction <add>, %43, %cst_27 [1] : vector<16x32xf32> to vector<16xf32>
    %45 = vector.shape_cast %44 : vector<16xf32> to vector<16x1xf32>
    %cst_28 = arith.constant 3.200000e+01 : f32
    %46 = vector.broadcast %cst_28 : f32 to vector<16x1xf32>
    %47 = arith.divf %45, %46 : vector<16x1xf32>
    %cst_29 = arith.constant 9.99999997E-7 : f32
    %48 = vector.broadcast %cst_29 : f32 to vector<16x1xf32>
    %49 = arith.addf %47, %48 : vector<16x1xf32>
    %50 = math.rsqrt %49 : vector<16x1xf32>
    %51 = vector.broadcast %50 : vector<16x1xf32> to vector<16x32xf32>
    %52 = arith.mulf %40, %51 : vector<16x32xf32>
    %53 = vector.broadcast %42 : vector<1x32xf32> to vector<16x32xf32>
    %54 = arith.mulf %52, %53 : vector<16x32xf32>
    %c0_30 = arith.constant 0 : index
    %c0_31 = arith.constant 0 : index
    %c0_32 = arith.constant 0 : index
    %55 = vector.load %arg12[%c0_30, %c0_31, %c0_32] : memref<2x32x96xf32, #tpu.memory_space<vmem>>, vector<1x32x96xf32>
    %56 = vector.shape_cast %55 : vector<1x32x96xf32> to vector<32x96xf32>
    %cst_33 = arith.constant dense<0.000000e+00> : vector<16x96xf32>
    %57 = tpu.matmul %54, %56, %cst_33 {dimension_numbers = #tpu.dot_dimension_numbers<[1], [0], [0], [1], [0, 0, 1, 1], [], []>} : vector<16x32xf32>, vector<32x96xf32>, vector<16x96xf32> -> vector<16x96xf32>
    %c0_34 = arith.constant 0 : index
    %c0_35 = arith.constant 0 : index
    %c0_36 = arith.constant 0 : index
    %58 = vector.load %arg13[%c0_34, %c0_35, %c0_36] : memref<2x32x32xf32, #tpu.memory_space<vmem>>, vector<1x32x32xf32>
    %59 = vector.shape_cast %58 : vector<1x32x32xf32> to vector<32x32xf32>
    %cst_37 = arith.constant 0.000000e+00 : f32
    %60 = vector.broadcast %cst_37 : f32 to vector<8x32xf32>
    %61 = vector.extract_strided_slice %57 {offsets = [0, 0], sizes = [8, 8], strides = [1, 1]} : vector<16x96xf32> to vector<8x8xf32>
    %62 = vector.extract_strided_slice %57 {offsets = [0, 32], sizes = [8, 8], strides = [1, 1]} : vector<16x96xf32> to vector<8x8xf32>
    %63 = vector.extract_strided_slice %57 {offsets = [0, 64], sizes = [8, 8], strides = [1, 1]} : vector<16x96xf32> to vector<8x8xf32>
    %cst_38 = arith.constant dense<0.000000e+00> : vector<8x8xf32>
    %64 = tpu.matmul %61, %62, %cst_38 {dimension_numbers = #tpu.dot_dimension_numbers<[1], [1], [0], [0], [0, 0, 1, 0], [], []>} : vector<8x8xf32>, vector<8x8xf32>, vector<8x8xf32> -> vector<8x8xf32>
    %c0_39 = arith.constant 0 : index
    %c0_40 = arith.constant 0 : index
    %c0_41 = arith.constant 0 : index
    %65 = vector.load %arg4[%c0_39, %c0_40, %c0_41] : memref<4x8x8xf32, #tpu.memory_space<vmem>>, vector<1x8x8xf32>
    %66 = vector.shape_cast %65 : vector<1x8x8xf32> to vector<8x8xf32>
    %67 = arith.addf %64, %66 : vector<8x8xf32>
    %cst_42 = arith.constant dense<0xFF800000> : vector<8xf32>
    %68 = vector.multi_reduction <maximumf>, %67, %cst_42 [1] : vector<8x8xf32> to vector<8xf32>
    %69 = vector.shape_cast %68 : vector<8xf32> to vector<8x1xf32>
    %70 = vector.broadcast %69 : vector<8x1xf32> to vector<8x8xf32>
    %71 = arith.subf %67, %70 : vector<8x8xf32>
    %72 = math.exp %71 : vector<8x8xf32>
    %cst_43 = arith.constant dense<0.000000e+00> : vector<8xf32>
    %73 = vector.multi_reduction <add>, %72, %cst_43 [1] : vector<8x8xf32> to vector<8xf32>
    %74 = vector.shape_cast %73 : vector<8xf32> to vector<8x1xf32>
    %75 = tpu.reciprocal %74 {approx = true} : vector<8x1xf32> -> vector<8x1xf32>
    %76 = vector.broadcast %75 : vector<8x1xf32> to vector<8x8xf32>
    %77 = arith.mulf %72, %76 : vector<8x8xf32>
    %cst_44 = arith.constant dense<0.000000e+00> : vector<8x8xf32>
    %78 = tpu.matmul %77, %63, %cst_44 {dimension_numbers = #tpu.dot_dimension_numbers<[1], [0], [0], [1], [0, 0, 1, 1], [], []>} : vector<8x8xf32>, vector<8x8xf32>, vector<8x8xf32> -> vector<8x8xf32>
    %79 = vector.extract_strided_slice %59 {offsets = [0, 0], sizes = [8, 32], strides = [1, 1]} : vector<32x32xf32> to vector<8x32xf32>
    %cst_45 = arith.constant dense<0.000000e+00> : vector<8x32xf32>
    %80 = tpu.matmul %78, %79, %cst_45 {dimension_numbers = #tpu.dot_dimension_numbers<[1], [0], [0], [1], [0, 0, 1, 1], [], []>} : vector<8x8xf32>, vector<8x32xf32>, vector<8x32xf32> -> vector<8x32xf32>
    %81 = arith.addf %60, %80 : vector<8x32xf32>
    %82 = vector.extract_strided_slice %57 {offsets = [0, 8], sizes = [8, 8], strides = [1, 1]} : vector<16x96xf32> to vector<8x8xf32>
    %83 = vector.extract_strided_slice %57 {offsets = [0, 40], sizes = [8, 8], strides = [1, 1]} : vector<16x96xf32> to vector<8x8xf32>
    %84 = vector.extract_strided_slice %57 {offsets = [0, 72], sizes = [8, 8], strides = [1, 1]} : vector<16x96xf32> to vector<8x8xf32>
    %cst_46 = arith.constant dense<0.000000e+00> : vector<8x8xf32>
    %85 = tpu.matmul %82, %83, %cst_46 {dimension_numbers = #tpu.dot_dimension_numbers<[1], [1], [0], [0], [0, 0, 1, 0], [], []>} : vector<8x8xf32>, vector<8x8xf32>, vector<8x8xf32> -> vector<8x8xf32>
    %c1 = arith.constant 1 : index
    %c0_47 = arith.constant 0 : index
    %c0_48 = arith.constant 0 : index
    %86 = vector.load %arg4[%c1, %c0_47, %c0_48] : memref<4x8x8xf32, #tpu.memory_space<vmem>>, vector<1x8x8xf32>
    %87 = vector.shape_cast %86 : vector<1x8x8xf32> to vector<8x8xf32>
    %88 = arith.addf %85, %87 : vector<8x8xf32>
    %cst_49 = arith.constant dense<0xFF800000> : vector<8xf32>
    %89 = vector.multi_reduction <maximumf>, %88, %cst_49 [1] : vector<8x8xf32> to vector<8xf32>
    %90 = vector.shape_cast %89 : vector<8xf32> to vector<8x1xf32>
    %91 = vector.broadcast %90 : vector<8x1xf32> to vector<8x8xf32>
    %92 = arith.subf %88, %91 : vector<8x8xf32>
    %93 = math.exp %92 : vector<8x8xf32>
    %cst_50 = arith.constant dense<0.000000e+00> : vector<8xf32>
    %94 = vector.multi_reduction <add>, %93, %cst_50 [1] : vector<8x8xf32> to vector<8xf32>
    %95 = vector.shape_cast %94 : vector<8xf32> to vector<8x1xf32>
    %96 = tpu.reciprocal %95 {approx = true} : vector<8x1xf32> -> vector<8x1xf32>
    %97 = vector.broadcast %96 : vector<8x1xf32> to vector<8x8xf32>
    %98 = arith.mulf %93, %97 : vector<8x8xf32>
    %cst_51 = arith.constant dense<0.000000e+00> : vector<8x8xf32>
    %99 = tpu.matmul %98, %84, %cst_51 {dimension_numbers = #tpu.dot_dimension_numbers<[1], [0], [0], [1], [0, 0, 1, 1], [], []>} : vector<8x8xf32>, vector<8x8xf32>, vector<8x8xf32> -> vector<8x8xf32>
    %100 = vector.extract_strided_slice %59 {offsets = [8, 0], sizes = [8, 32], strides = [1, 1]} : vector<32x32xf32> to vector<8x32xf32>
    %cst_52 = arith.constant dense<0.000000e+00> : vector<8x32xf32>
    %101 = tpu.matmul %99, %100, %cst_52 {dimension_numbers = #tpu.dot_dimension_numbers<[1], [0], [0], [1], [0, 0, 1, 1], [], []>} : vector<8x8xf32>, vector<8x32xf32>, vector<8x32xf32> -> vector<8x32xf32>
    %102 = arith.addf %81, %101 : vector<8x32xf32>
    %103 = vector.extract_strided_slice %57 {offsets = [0, 16], sizes = [8, 8], strides = [1, 1]} : vector<16x96xf32> to vector<8x8xf32>
    %104 = vector.extract_strided_slice %57 {offsets = [0, 48], sizes = [8, 8], strides = [1, 1]} : vector<16x96xf32> to vector<8x8xf32>
    %105 = vector.extract_strided_slice %57 {offsets = [0, 80], sizes = [8, 8], strides = [1, 1]} : vector<16x96xf32> to vector<8x8xf32>
    %cst_53 = arith.constant dense<0.000000e+00> : vector<8x8xf32>
    %106 = tpu.matmul %103, %104, %cst_53 {dimension_numbers = #tpu.dot_dimension_numbers<[1], [1], [0], [0], [0, 0, 1, 0], [], []>} : vector<8x8xf32>, vector<8x8xf32>, vector<8x8xf32> -> vector<8x8xf32>
    %c2 = arith.constant 2 : index
    %c0_54 = arith.constant 0 : index
    %c0_55 = arith.constant 0 : index
    %107 = vector.load %arg4[%c2, %c0_54, %c0_55] : memref<4x8x8xf32, #tpu.memory_space<vmem>>, vector<1x8x8xf32>
    %108 = vector.shape_cast %107 : vector<1x8x8xf32> to vector<8x8xf32>
    %109 = arith.addf %106, %108 : vector<8x8xf32>
    %cst_56 = arith.constant dense<0xFF800000> : vector<8xf32>
    %110 = vector.multi_reduction <maximumf>, %109, %cst_56 [1] : vector<8x8xf32> to vector<8xf32>
    %111 = vector.shape_cast %110 : vector<8xf32> to vector<8x1xf32>
    %112 = vector.broadcast %111 : vector<8x1xf32> to vector<8x8xf32>
    %113 = arith.subf %109, %112 : vector<8x8xf32>
    %114 = math.exp %113 : vector<8x8xf32>
    %cst_57 = arith.constant dense<0.000000e+00> : vector<8xf32>
    %115 = vector.multi_reduction <add>, %114, %cst_57 [1] : vector<8x8xf32> to vector<8xf32>
    %116 = vector.shape_cast %115 : vector<8xf32> to vector<8x1xf32>
    %117 = tpu.reciprocal %116 {approx = true} : vector<8x1xf32> -> vector<8x1xf32>
    %118 = vector.broadcast %117 : vector<8x1xf32> to vector<8x8xf32>
    %119 = arith.mulf %114, %118 : vector<8x8xf32>
    %cst_58 = arith.constant dense<0.000000e+00> : vector<8x8xf32>
    %120 = tpu.matmul %119, %105, %cst_58 {dimension_numbers = #tpu.dot_dimension_numbers<[1], [0], [0], [1], [0, 0, 1, 1], [], []>} : vector<8x8xf32>, vector<8x8xf32>, vector<8x8xf32> -> vector<8x8xf32>
    %121 = vector.extract_strided_slice %59 {offsets = [16, 0], sizes = [8, 32], strides = [1, 1]} : vector<32x32xf32> to vector<8x32xf32>
    %cst_59 = arith.constant dense<0.000000e+00> : vector<8x32xf32>
    %122 = tpu.matmul %120, %121, %cst_59 {dimension_numbers = #tpu.dot_dimension_numbers<[1], [0], [0], [1], [0, 0, 1, 1], [], []>} : vector<8x8xf32>, vector<8x32xf32>, vector<8x32xf32> -> vector<8x32xf32>
    %123 = arith.addf %102, %122 : vector<8x32xf32>
    %124 = vector.extract_strided_slice %57 {offsets = [0, 24], sizes = [8, 8], strides = [1, 1]} : vector<16x96xf32> to vector<8x8xf32>
    %125 = vector.extract_strided_slice %57 {offsets = [0, 56], sizes = [8, 8], strides = [1, 1]} : vector<16x96xf32> to vector<8x8xf32>
    %126 = vector.extract_strided_slice %57 {offsets = [0, 88], sizes = [8, 8], strides = [1, 1]} : vector<16x96xf32> to vector<8x8xf32>
    %cst_60 = arith.constant dense<0.000000e+00> : vector<8x8xf32>
    %127 = tpu.matmul %124, %125, %cst_60 {dimension_numbers = #tpu.dot_dimension_numbers<[1], [1], [0], [0], [0, 0, 1, 0], [], []>} : vector<8x8xf32>, vector<8x8xf32>, vector<8x8xf32> -> vector<8x8xf32>
    %c3 = arith.constant 3 : index
    %c0_61 = arith.constant 0 : index
    %c0_62 = arith.constant 0 : index
    %128 = vector.load %arg4[%c3, %c0_61, %c0_62] : memref<4x8x8xf32, #tpu.memory_space<vmem>>, vector<1x8x8xf32>
    %129 = vector.shape_cast %128 : vector<1x8x8xf32> to vector<8x8xf32>
    %130 = arith.addf %127, %129 : vector<8x8xf32>
    %cst_63 = arith.constant dense<0xFF800000> : vector<8xf32>
    %131 = vector.multi_reduction <maximumf>, %130, %cst_63 [1] : vector<8x8xf32> to vector<8xf32>
    %132 = vector.shape_cast %131 : vector<8xf32> to vector<8x1xf32>
    %133 = vector.broadcast %132 : vector<8x1xf32> to vector<8x8xf32>
    %134 = arith.subf %130, %133 : vector<8x8xf32>
    %135 = math.exp %134 : vector<8x8xf32>
    %cst_64 = arith.constant dense<0.000000e+00> : vector<8xf32>
    %136 = vector.multi_reduction <add>, %135, %cst_64 [1] : vector<8x8xf32> to vector<8xf32>
    %137 = vector.shape_cast %136 : vector<8xf32> to vector<8x1xf32>
    %138 = tpu.reciprocal %137 {approx = true} : vector<8x1xf32> -> vector<8x1xf32>
    %139 = vector.broadcast %138 : vector<8x1xf32> to vector<8x8xf32>
    %140 = arith.mulf %135, %139 : vector<8x8xf32>
    %cst_65 = arith.constant dense<0.000000e+00> : vector<8x8xf32>
    %141 = tpu.matmul %140, %126, %cst_65 {dimension_numbers = #tpu.dot_dimension_numbers<[1], [0], [0], [1], [0, 0, 1, 1], [], []>} : vector<8x8xf32>, vector<8x8xf32>, vector<8x8xf32> -> vector<8x8xf32>
    %142 = vector.extract_strided_slice %59 {offsets = [24, 0], sizes = [8, 32], strides = [1, 1]} : vector<32x32xf32> to vector<8x32xf32>
    %cst_66 = arith.constant dense<0.000000e+00> : vector<8x32xf32>
    %143 = tpu.matmul %141, %142, %cst_66 {dimension_numbers = #tpu.dot_dimension_numbers<[1], [0], [0], [1], [0, 0, 1, 1], [], []>} : vector<8x8xf32>, vector<8x32xf32>, vector<8x32xf32> -> vector<8x32xf32>
    %144 = arith.addf %123, %143 : vector<8x32xf32>
    %cst_67 = arith.constant 0.000000e+00 : f32
    %145 = vector.broadcast %cst_67 : f32 to vector<8x32xf32>
    %146 = vector.extract_strided_slice %57 {offsets = [8, 0], sizes = [8, 8], strides = [1, 1]} : vector<16x96xf32> to vector<8x8xf32>
    %147 = vector.extract_strided_slice %57 {offsets = [8, 32], sizes = [8, 8], strides = [1, 1]} : vector<16x96xf32> to vector<8x8xf32>
    %148 = vector.extract_strided_slice %57 {offsets = [8, 64], sizes = [8, 8], strides = [1, 1]} : vector<16x96xf32> to vector<8x8xf32>
    %cst_68 = arith.constant dense<0.000000e+00> : vector<8x8xf32>
    %149 = tpu.matmul %146, %147, %cst_68 {dimension_numbers = #tpu.dot_dimension_numbers<[1], [1], [0], [0], [0, 0, 1, 0], [], []>} : vector<8x8xf32>, vector<8x8xf32>, vector<8x8xf32> -> vector<8x8xf32>
    %c0_69 = arith.constant 0 : index
    %c0_70 = arith.constant 0 : index
    %c0_71 = arith.constant 0 : index
    %150 = vector.load %arg4[%c0_69, %c0_70, %c0_71] : memref<4x8x8xf32, #tpu.memory_space<vmem>>, vector<1x8x8xf32>
    %151 = vector.shape_cast %150 : vector<1x8x8xf32> to vector<8x8xf32>
    %152 = arith.addf %149, %151 : vector<8x8xf32>
    %cst_72 = arith.constant dense<0xFF800000> : vector<8xf32>
    %153 = vector.multi_reduction <maximumf>, %152, %cst_72 [1] : vector<8x8xf32> to vector<8xf32>
    %154 = vector.shape_cast %153 : vector<8xf32> to vector<8x1xf32>
    %155 = vector.broadcast %154 : vector<8x1xf32> to vector<8x8xf32>
    %156 = arith.subf %152, %155 : vector<8x8xf32>
    %157 = math.exp %156 : vector<8x8xf32>
    %cst_73 = arith.constant dense<0.000000e+00> : vector<8xf32>
    %158 = vector.multi_reduction <add>, %157, %cst_73 [1] : vector<8x8xf32> to vector<8xf32>
    %159 = vector.shape_cast %158 : vector<8xf32> to vector<8x1xf32>
    %160 = tpu.reciprocal %159 {approx = true} : vector<8x1xf32> -> vector<8x1xf32>
    %161 = vector.broadcast %160 : vector<8x1xf32> to vector<8x8xf32>
    %162 = arith.mulf %157, %161 : vector<8x8xf32>
    %cst_74 = arith.constant dense<0.000000e+00> : vector<8x8xf32>
    %163 = tpu.matmul %162, %148, %cst_74 {dimension_numbers = #tpu.dot_dimension_numbers<[1], [0], [0], [1], [0, 0, 1, 1], [], []>} : vector<8x8xf32>, vector<8x8xf32>, vector<8x8xf32> -> vector<8x8xf32>
    %164 = vector.extract_strided_slice %59 {offsets = [0, 0], sizes = [8, 32], strides = [1, 1]} : vector<32x32xf32> to vector<8x32xf32>
    %cst_75 = arith.constant dense<0.000000e+00> : vector<8x32xf32>
    %165 = tpu.matmul %163, %164, %cst_75 {dimension_numbers = #tpu.dot_dimension_numbers<[1], [0], [0], [1], [0, 0, 1, 1], [], []>} : vector<8x8xf32>, vector<8x32xf32>, vector<8x32xf32> -> vector<8x32xf32>
    %166 = arith.addf %145, %165 : vector<8x32xf32>
    %167 = vector.extract_strided_slice %57 {offsets = [8, 8], sizes = [8, 8], strides = [1, 1]} : vector<16x96xf32> to vector<8x8xf32>
    %168 = vector.extract_strided_slice %57 {offsets = [8, 40], sizes = [8, 8], strides = [1, 1]} : vector<16x96xf32> to vector<8x8xf32>
    %169 = vector.extract_strided_slice %57 {offsets = [8, 72], sizes = [8, 8], strides = [1, 1]} : vector<16x96xf32> to vector<8x8xf32>
    %cst_76 = arith.constant dense<0.000000e+00> : vector<8x8xf32>
    %170 = tpu.matmul %167, %168, %cst_76 {dimension_numbers = #tpu.dot_dimension_numbers<[1], [1], [0], [0], [0, 0, 1, 0], [], []>} : vector<8x8xf32>, vector<8x8xf32>, vector<8x8xf32> -> vector<8x8xf32>
    %c1_77 = arith.constant 1 : index
    %c0_78 = arith.constant 0 : index
    %c0_79 = arith.constant 0 : index
    %171 = vector.load %arg4[%c1_77, %c0_78, %c0_79] : memref<4x8x8xf32, #tpu.memory_space<vmem>>, vector<1x8x8xf32>
    %172 = vector.shape_cast %171 : vector<1x8x8xf32> to vector<8x8xf32>
    %173 = arith.addf %170, %172 : vector<8x8xf32>
    %cst_80 = arith.constant dense<0xFF800000> : vector<8xf32>
    %174 = vector.multi_reduction <maximumf>, %173, %cst_80 [1] : vector<8x8xf32> to vector<8xf32>
    %175 = vector.shape_cast %174 : vector<8xf32> to vector<8x1xf32>
    %176 = vector.broadcast %175 : vector<8x1xf32> to vector<8x8xf32>
    %177 = arith.subf %173, %176 : vector<8x8xf32>
    %178 = math.exp %177 : vector<8x8xf32>
    %cst_81 = arith.constant dense<0.000000e+00> : vector<8xf32>
    %179 = vector.multi_reduction <add>, %178, %cst_81 [1] : vector<8x8xf32> to vector<8xf32>
    %180 = vector.shape_cast %179 : vector<8xf32> to vector<8x1xf32>
    %181 = tpu.reciprocal %180 {approx = true} : vector<8x1xf32> -> vector<8x1xf32>
    %182 = vector.broadcast %181 : vector<8x1xf32> to vector<8x8xf32>
    %183 = arith.mulf %178, %182 : vector<8x8xf32>
    %cst_82 = arith.constant dense<0.000000e+00> : vector<8x8xf32>
    %184 = tpu.matmul %183, %169, %cst_82 {dimension_numbers = #tpu.dot_dimension_numbers<[1], [0], [0], [1], [0, 0, 1, 1], [], []>} : vector<8x8xf32>, vector<8x8xf32>, vector<8x8xf32> -> vector<8x8xf32>
    %185 = vector.extract_strided_slice %59 {offsets = [8, 0], sizes = [8, 32], strides = [1, 1]} : vector<32x32xf32> to vector<8x32xf32>
    %cst_83 = arith.constant dense<0.000000e+00> : vector<8x32xf32>
    %186 = tpu.matmul %184, %185, %cst_83 {dimension_numbers = #tpu.dot_dimension_numbers<[1], [0], [0], [1], [0, 0, 1, 1], [], []>} : vector<8x8xf32>, vector<8x32xf32>, vector<8x32xf32> -> vector<8x32xf32>
    %187 = arith.addf %166, %186 : vector<8x32xf32>
    %188 = vector.extract_strided_slice %57 {offsets = [8, 16], sizes = [8, 8], strides = [1, 1]} : vector<16x96xf32> to vector<8x8xf32>
    %189 = vector.extract_strided_slice %57 {offsets = [8, 48], sizes = [8, 8], strides = [1, 1]} : vector<16x96xf32> to vector<8x8xf32>
    %190 = vector.extract_strided_slice %57 {offsets = [8, 80], sizes = [8, 8], strides = [1, 1]} : vector<16x96xf32> to vector<8x8xf32>
    %cst_84 = arith.constant dense<0.000000e+00> : vector<8x8xf32>
    %191 = tpu.matmul %188, %189, %cst_84 {dimension_numbers = #tpu.dot_dimension_numbers<[1], [1], [0], [0], [0, 0, 1, 0], [], []>} : vector<8x8xf32>, vector<8x8xf32>, vector<8x8xf32> -> vector<8x8xf32>
    %c2_85 = arith.constant 2 : index
    %c0_86 = arith.constant 0 : index
    %c0_87 = arith.constant 0 : index
    %192 = vector.load %arg4[%c2_85, %c0_86, %c0_87] : memref<4x8x8xf32, #tpu.memory_space<vmem>>, vector<1x8x8xf32>
    %193 = vector.shape_cast %192 : vector<1x8x8xf32> to vector<8x8xf32>
    %194 = arith.addf %191, %193 : vector<8x8xf32>
    %cst_88 = arith.constant dense<0xFF800000> : vector<8xf32>
    %195 = vector.multi_reduction <maximumf>, %194, %cst_88 [1] : vector<8x8xf32> to vector<8xf32>
    %196 = vector.shape_cast %195 : vector<8xf32> to vector<8x1xf32>
    %197 = vector.broadcast %196 : vector<8x1xf32> to vector<8x8xf32>
    %198 = arith.subf %194, %197 : vector<8x8xf32>
    %199 = math.exp %198 : vector<8x8xf32>
    %cst_89 = arith.constant dense<0.000000e+00> : vector<8xf32>
    %200 = vector.multi_reduction <add>, %199, %cst_89 [1] : vector<8x8xf32> to vector<8xf32>
    %201 = vector.shape_cast %200 : vector<8xf32> to vector<8x1xf32>
    %202 = tpu.reciprocal %201 {approx = true} : vector<8x1xf32> -> vector<8x1xf32>
    %203 = vector.broadcast %202 : vector<8x1xf32> to vector<8x8xf32>
    %204 = arith.mulf %199, %203 : vector<8x8xf32>
    %cst_90 = arith.constant dense<0.000000e+00> : vector<8x8xf32>
    %205 = tpu.matmul %204, %190, %cst_90 {dimension_numbers = #tpu.dot_dimension_numbers<[1], [0], [0], [1], [0, 0, 1, 1], [], []>} : vector<8x8xf32>, vector<8x8xf32>, vector<8x8xf32> -> vector<8x8xf32>
    %206 = vector.extract_strided_slice %59 {offsets = [16, 0], sizes = [8, 32], strides = [1, 1]} : vector<32x32xf32> to vector<8x32xf32>
    %cst_91 = arith.constant dense<0.000000e+00> : vector<8x32xf32>
    %207 = tpu.matmul %205, %206, %cst_91 {dimension_numbers = #tpu.dot_dimension_numbers<[1], [0], [0], [1], [0, 0, 1, 1], [], []>} : vector<8x8xf32>, vector<8x32xf32>, vector<8x32xf32> -> vector<8x32xf32>
    %208 = arith.addf %187, %207 : vector<8x32xf32>
    %209 = vector.extract_strided_slice %57 {offsets = [8, 24], sizes = [8, 8], strides = [1, 1]} : vector<16x96xf32> to vector<8x8xf32>
    %210 = vector.extract_strided_slice %57 {offsets = [8, 56], sizes = [8, 8], strides = [1, 1]} : vector<16x96xf32> to vector<8x8xf32>
    %211 = vector.extract_strided_slice %57 {offsets = [8, 88], sizes = [8, 8], strides = [1, 1]} : vector<16x96xf32> to vector<8x8xf32>
    %cst_92 = arith.constant dense<0.000000e+00> : vector<8x8xf32>
    %212 = tpu.matmul %209, %210, %cst_92 {dimension_numbers = #tpu.dot_dimension_numbers<[1], [1], [0], [0], [0, 0, 1, 0], [], []>} : vector<8x8xf32>, vector<8x8xf32>, vector<8x8xf32> -> vector<8x8xf32>
    %c3_93 = arith.constant 3 : index
    %c0_94 = arith.constant 0 : index
    %c0_95 = arith.constant 0 : index
    %213 = vector.load %arg4[%c3_93, %c0_94, %c0_95] : memref<4x8x8xf32, #tpu.memory_space<vmem>>, vector<1x8x8xf32>
    %214 = vector.shape_cast %213 : vector<1x8x8xf32> to vector<8x8xf32>
    %215 = arith.addf %212, %214 : vector<8x8xf32>
    %cst_96 = arith.constant dense<0xFF800000> : vector<8xf32>
    %216 = vector.multi_reduction <maximumf>, %215, %cst_96 [1] : vector<8x8xf32> to vector<8xf32>
    %217 = vector.shape_cast %216 : vector<8xf32> to vector<8x1xf32>
    %218 = vector.broadcast %217 : vector<8x1xf32> to vector<8x8xf32>
    %219 = arith.subf %215, %218 : vector<8x8xf32>
    %220 = math.exp %219 : vector<8x8xf32>
    %cst_97 = arith.constant dense<0.000000e+00> : vector<8xf32>
    %221 = vector.multi_reduction <add>, %220, %cst_97 [1] : vector<8x8xf32> to vector<8xf32>
    %222 = vector.shape_cast %221 : vector<8xf32> to vector<8x1xf32>
    %223 = tpu.reciprocal %222 {approx = true} : vector<8x1xf32> -> vector<8x1xf32>
    %224 = vector.broadcast %223 : vector<8x1xf32> to vector<8x8xf32>
    %225 = arith.mulf %220, %224 : vector<8x8xf32>
    %cst_98 = arith.constant dense<0.000000e+00> : vector<8x8xf32>
    %226 = tpu.matmul %225, %211, %cst_98 {dimension_numbers = #tpu.dot_dimension_numbers<[1], [0], [0], [1], [0, 0, 1, 1], [], []>} : vector<8x8xf32>, vector<8x8xf32>, vector<8x8xf32> -> vector<8x8xf32>
    %227 = vector.extract_strided_slice %59 {offsets = [24, 0], sizes = [8, 32], strides = [1, 1]} : vector<32x32xf32> to vector<8x32xf32>
    %cst_99 = arith.constant dense<0.000000e+00> : vector<8x32xf32>
    %228 = tpu.matmul %226, %227, %cst_99 {dimension_numbers = #tpu.dot_dimension_numbers<[1], [0], [0], [1], [0, 0, 1, 1], [], []>} : vector<8x8xf32>, vector<8x32xf32>, vector<8x32xf32> -> vector<8x32xf32>
    %229 = arith.addf %208, %228 : vector<8x32xf32>
    %230 = tpu.concatenate %144, %229 in 0 : vector<8x32xf32>, vector<8x32xf32> -> vector<16x32xf32>
    %231 = arith.addf %40, %230 : vector<16x32xf32>
    %c0_100 = arith.constant 0 : index
    %c0_101 = arith.constant 0 : index
    %c0_102 = arith.constant 0 : index
    %232 = vector.load %arg14[%c0_100, %c0_101, %c0_102] : memref<2x1x32xf32, #tpu.memory_space<vmem>>, vector<1x1x32xf32>
    %233 = vector.shape_cast %232 : vector<1x1x32xf32> to vector<1x32xf32>
    %234 = arith.mulf %231, %231 : vector<16x32xf32>
    %cst_103 = arith.constant dense<0.000000e+00> : vector<16xf32>
    %235 = vector.multi_reduction <add>, %234, %cst_103 [1] : vector<16x32xf32> to vector<16xf32>
    %236 = vector.shape_cast %235 : vector<16xf32> to vector<16x1xf32>
    %cst_104 = arith.constant 3.200000e+01 : f32
    %237 = vector.broadcast %cst_104 : f32 to vector<16x1xf32>
    %238 = arith.divf %236, %237 : vector<16x1xf32>
    %cst_105 = arith.constant 9.99999997E-7 : f32
    %239 = vector.broadcast %cst_105 : f32 to vector<16x1xf32>
    %240 = arith.addf %238, %239 : vector<16x1xf32>
    %241 = math.rsqrt %240 : vector<16x1xf32>
    %242 = vector.broadcast %241 : vector<16x1xf32> to vector<16x32xf32>
    %243 = arith.mulf %231, %242 : vector<16x32xf32>
    %244 = vector.broadcast %233 : vector<1x32xf32> to vector<16x32xf32>
    %245 = arith.mulf %243, %244 : vector<16x32xf32>
    %c0_106 = arith.constant 0 : index
    %c0_107 = arith.constant 0 : index
    %c0_108 = arith.constant 0 : index
    %246 = vector.load %arg15[%c0_106, %c0_107, %c0_108] : memref<2x32x64xf32, #tpu.memory_space<vmem>>, vector<1x32x64xf32>
    %247 = vector.shape_cast %246 : vector<1x32x64xf32> to vector<32x64xf32>
    %cst_109 = arith.constant dense<0.000000e+00> : vector<16x64xf32>
    %248 = tpu.matmul %245, %247, %cst_109 {dimension_numbers = #tpu.dot_dimension_numbers<[1], [0], [0], [1], [0, 0, 1, 1], [], []>} : vector<16x32xf32>, vector<32x64xf32>, vector<16x64xf32> -> vector<16x64xf32>
    %cst_110 = arith.constant 0.000000e+00 : f32
    %249 = vector.broadcast %cst_110 : f32 to vector<16x64xf32>
    %250 = arith.maximumf %248, %249 : vector<16x64xf32>
    %c0_111 = arith.constant 0 : index
    %c0_112 = arith.constant 0 : index
    %c0_113 = arith.constant 0 : index
    %251 = vector.load %arg16[%c0_111, %c0_112, %c0_113] : memref<2x64x32xf32, #tpu.memory_space<vmem>>, vector<1x64x32xf32>
    %252 = vector.shape_cast %251 : vector<1x64x32xf32> to vector<64x32xf32>
    %cst_114 = arith.constant dense<0.000000e+00> : vector<16x32xf32>
    %253 = tpu.matmul %250, %252, %cst_114 {dimension_numbers = #tpu.dot_dimension_numbers<[1], [0], [0], [1], [0, 0, 1, 1], [], []>} : vector<16x64xf32>, vector<64x32xf32>, vector<16x32xf32> -> vector<16x32xf32>
    %254 = arith.addf %231, %253 : vector<16x32xf32>
    %c1_115 = arith.constant 1 : index
    %c0_116 = arith.constant 0 : index
    %c0_117 = arith.constant 0 : index
    %255 = vector.load %arg11[%c1_115, %c0_116, %c0_117] : memref<2x1x32xf32, #tpu.memory_space<vmem>>, vector<1x1x32xf32>
    %256 = vector.shape_cast %255 : vector<1x1x32xf32> to vector<1x32xf32>
    %257 = arith.mulf %254, %254 : vector<16x32xf32>
    %cst_118 = arith.constant dense<0.000000e+00> : vector<16xf32>
    %258 = vector.multi_reduction <add>, %257, %cst_118 [1] : vector<16x32xf32> to vector<16xf32>
    %259 = vector.shape_cast %258 : vector<16xf32> to vector<16x1xf32>
    %cst_119 = arith.constant 3.200000e+01 : f32
    %260 = vector.broadcast %cst_119 : f32 to vector<16x1xf32>
    %261 = arith.divf %259, %260 : vector<16x1xf32>
    %cst_120 = arith.constant 9.99999997E-7 : f32
    %262 = vector.broadcast %cst_120 : f32 to vector<16x1xf32>
    %263 = arith.addf %261, %262 : vector<16x1xf32>
    %264 = math.rsqrt %263 : vector<16x1xf32>
    %265 = vector.broadcast %264 : vector<16x1xf32> to vector<16x32xf32>
    %266 = arith.mulf %254, %265 : vector<16x32xf32>
    %267 = vector.broadcast %256 : vector<1x32xf32> to vector<16x32xf32>
    %268 = arith.mulf %266, %267 : vector<16x32xf32>
    %c1_121 = arith.constant 1 : index
    %c0_122 = arith.constant 0 : index
    %c0_123 = arith.constant 0 : index
    %269 = vector.load %arg12[%c1_121, %c0_122, %c0_123] : memref<2x32x96xf32, #tpu.memory_space<vmem>>, vector<1x32x96xf32>
    %270 = vector.shape_cast %269 : vector<1x32x96xf32> to vector<32x96xf32>
    %cst_124 = arith.constant dense<0.000000e+00> : vector<16x96xf32>
    %271 = tpu.matmul %268, %270, %cst_124 {dimension_numbers = #tpu.dot_dimension_numbers<[1], [0], [0], [1], [0, 0, 1, 1], [], []>} : vector<16x32xf32>, vector<32x96xf32>, vector<16x96xf32> -> vector<16x96xf32>
    %c1_125 = arith.constant 1 : index
    %c0_126 = arith.constant 0 : index
    %c0_127 = arith.constant 0 : index
    %272 = vector.load %arg13[%c1_125, %c0_126, %c0_127] : memref<2x32x32xf32, #tpu.memory_space<vmem>>, vector<1x32x32xf32>
    %273 = vector.shape_cast %272 : vector<1x32x32xf32> to vector<32x32xf32>
    %cst_128 = arith.constant 0.000000e+00 : f32
    %274 = vector.broadcast %cst_128 : f32 to vector<8x32xf32>
    %275 = vector.extract_strided_slice %271 {offsets = [0, 0], sizes = [8, 8], strides = [1, 1]} : vector<16x96xf32> to vector<8x8xf32>
    %276 = vector.extract_strided_slice %271 {offsets = [0, 32], sizes = [8, 8], strides = [1, 1]} : vector<16x96xf32> to vector<8x8xf32>
    %277 = vector.extract_strided_slice %271 {offsets = [0, 64], sizes = [8, 8], strides = [1, 1]} : vector<16x96xf32> to vector<8x8xf32>
    %cst_129 = arith.constant dense<0.000000e+00> : vector<8x8xf32>
    %278 = tpu.matmul %275, %276, %cst_129 {dimension_numbers = #tpu.dot_dimension_numbers<[1], [1], [0], [0], [0, 0, 1, 0], [], []>} : vector<8x8xf32>, vector<8x8xf32>, vector<8x8xf32> -> vector<8x8xf32>
    %c0_130 = arith.constant 0 : index
    %c0_131 = arith.constant 0 : index
    %c0_132 = arith.constant 0 : index
    %279 = vector.load %arg4[%c0_130, %c0_131, %c0_132] : memref<4x8x8xf32, #tpu.memory_space<vmem>>, vector<1x8x8xf32>
    %280 = vector.shape_cast %279 : vector<1x8x8xf32> to vector<8x8xf32>
    %281 = arith.addf %278, %280 : vector<8x8xf32>
    %cst_133 = arith.constant dense<0xFF800000> : vector<8xf32>
    %282 = vector.multi_reduction <maximumf>, %281, %cst_133 [1] : vector<8x8xf32> to vector<8xf32>
    %283 = vector.shape_cast %282 : vector<8xf32> to vector<8x1xf32>
    %284 = vector.broadcast %283 : vector<8x1xf32> to vector<8x8xf32>
    %285 = arith.subf %281, %284 : vector<8x8xf32>
    %286 = math.exp %285 : vector<8x8xf32>
    %cst_134 = arith.constant dense<0.000000e+00> : vector<8xf32>
    %287 = vector.multi_reduction <add>, %286, %cst_134 [1] : vector<8x8xf32> to vector<8xf32>
    %288 = vector.shape_cast %287 : vector<8xf32> to vector<8x1xf32>
    %289 = tpu.reciprocal %288 {approx = true} : vector<8x1xf32> -> vector<8x1xf32>
    %290 = vector.broadcast %289 : vector<8x1xf32> to vector<8x8xf32>
    %291 = arith.mulf %286, %290 : vector<8x8xf32>
    %cst_135 = arith.constant dense<0.000000e+00> : vector<8x8xf32>
    %292 = tpu.matmul %291, %277, %cst_135 {dimension_numbers = #tpu.dot_dimension_numbers<[1], [0], [0], [1], [0, 0, 1, 1], [], []>} : vector<8x8xf32>, vector<8x8xf32>, vector<8x8xf32> -> vector<8x8xf32>
    %293 = vector.extract_strided_slice %273 {offsets = [0, 0], sizes = [8, 32], strides = [1, 1]} : vector<32x32xf32> to vector<8x32xf32>
    %cst_136 = arith.constant dense<0.000000e+00> : vector<8x32xf32>
    %294 = tpu.matmul %292, %293, %cst_136 {dimension_numbers = #tpu.dot_dimension_numbers<[1], [0], [0], [1], [0, 0, 1, 1], [], []>} : vector<8x8xf32>, vector<8x32xf32>, vector<8x32xf32> -> vector<8x32xf32>
    %295 = arith.addf %274, %294 : vector<8x32xf32>
    %296 = vector.extract_strided_slice %271 {offsets = [0, 8], sizes = [8, 8], strides = [1, 1]} : vector<16x96xf32> to vector<8x8xf32>
    %297 = vector.extract_strided_slice %271 {offsets = [0, 40], sizes = [8, 8], strides = [1, 1]} : vector<16x96xf32> to vector<8x8xf32>
    %298 = vector.extract_strided_slice %271 {offsets = [0, 72], sizes = [8, 8], strides = [1, 1]} : vector<16x96xf32> to vector<8x8xf32>
    %cst_137 = arith.constant dense<0.000000e+00> : vector<8x8xf32>
    %299 = tpu.matmul %296, %297, %cst_137 {dimension_numbers = #tpu.dot_dimension_numbers<[1], [1], [0], [0], [0, 0, 1, 0], [], []>} : vector<8x8xf32>, vector<8x8xf32>, vector<8x8xf32> -> vector<8x8xf32>
    %c1_138 = arith.constant 1 : index
    %c0_139 = arith.constant 0 : index
    %c0_140 = arith.constant 0 : index
    %300 = vector.load %arg4[%c1_138, %c0_139, %c0_140] : memref<4x8x8xf32, #tpu.memory_space<vmem>>, vector<1x8x8xf32>
    %301 = vector.shape_cast %300 : vector<1x8x8xf32> to vector<8x8xf32>
    %302 = arith.addf %299, %301 : vector<8x8xf32>
    %cst_141 = arith.constant dense<0xFF800000> : vector<8xf32>
    %303 = vector.multi_reduction <maximumf>, %302, %cst_141 [1] : vector<8x8xf32> to vector<8xf32>
    %304 = vector.shape_cast %303 : vector<8xf32> to vector<8x1xf32>
    %305 = vector.broadcast %304 : vector<8x1xf32> to vector<8x8xf32>
    %306 = arith.subf %302, %305 : vector<8x8xf32>
    %307 = math.exp %306 : vector<8x8xf32>
    %cst_142 = arith.constant dense<0.000000e+00> : vector<8xf32>
    %308 = vector.multi_reduction <add>, %307, %cst_142 [1] : vector<8x8xf32> to vector<8xf32>
    %309 = vector.shape_cast %308 : vector<8xf32> to vector<8x1xf32>
    %310 = tpu.reciprocal %309 {approx = true} : vector<8x1xf32> -> vector<8x1xf32>
    %311 = vector.broadcast %310 : vector<8x1xf32> to vector<8x8xf32>
    %312 = arith.mulf %307, %311 : vector<8x8xf32>
    %cst_143 = arith.constant dense<0.000000e+00> : vector<8x8xf32>
    %313 = tpu.matmul %312, %298, %cst_143 {dimension_numbers = #tpu.dot_dimension_numbers<[1], [0], [0], [1], [0, 0, 1, 1], [], []>} : vector<8x8xf32>, vector<8x8xf32>, vector<8x8xf32> -> vector<8x8xf32>
    %314 = vector.extract_strided_slice %273 {offsets = [8, 0], sizes = [8, 32], strides = [1, 1]} : vector<32x32xf32> to vector<8x32xf32>
    %cst_144 = arith.constant dense<0.000000e+00> : vector<8x32xf32>
    %315 = tpu.matmul %313, %314, %cst_144 {dimension_numbers = #tpu.dot_dimension_numbers<[1], [0], [0], [1], [0, 0, 1, 1], [], []>} : vector<8x8xf32>, vector<8x32xf32>, vector<8x32xf32> -> vector<8x32xf32>
    %316 = arith.addf %295, %315 : vector<8x32xf32>
    %317 = vector.extract_strided_slice %271 {offsets = [0, 16], sizes = [8, 8], strides = [1, 1]} : vector<16x96xf32> to vector<8x8xf32>
    %318 = vector.extract_strided_slice %271 {offsets = [0, 48], sizes = [8, 8], strides = [1, 1]} : vector<16x96xf32> to vector<8x8xf32>
    %319 = vector.extract_strided_slice %271 {offsets = [0, 80], sizes = [8, 8], strides = [1, 1]} : vector<16x96xf32> to vector<8x8xf32>
    %cst_145 = arith.constant dense<0.000000e+00> : vector<8x8xf32>
    %320 = tpu.matmul %317, %318, %cst_145 {dimension_numbers = #tpu.dot_dimension_numbers<[1], [1], [0], [0], [0, 0, 1, 0], [], []>} : vector<8x8xf32>, vector<8x8xf32>, vector<8x8xf32> -> vector<8x8xf32>
    %c2_146 = arith.constant 2 : index
    %c0_147 = arith.constant 0 : index
    %c0_148 = arith.constant 0 : index
    %321 = vector.load %arg4[%c2_146, %c0_147, %c0_148] : memref<4x8x8xf32, #tpu.memory_space<vmem>>, vector<1x8x8xf32>
    %322 = vector.shape_cast %321 : vector<1x8x8xf32> to vector<8x8xf32>
    %323 = arith.addf %320, %322 : vector<8x8xf32>
    %cst_149 = arith.constant dense<0xFF800000> : vector<8xf32>
    %324 = vector.multi_reduction <maximumf>, %323, %cst_149 [1] : vector<8x8xf32> to vector<8xf32>
    %325 = vector.shape_cast %324 : vector<8xf32> to vector<8x1xf32>
    %326 = vector.broadcast %325 : vector<8x1xf32> to vector<8x8xf32>
    %327 = arith.subf %323, %326 : vector<8x8xf32>
    %328 = math.exp %327 : vector<8x8xf32>
    %cst_150 = arith.constant dense<0.000000e+00> : vector<8xf32>
    %329 = vector.multi_reduction <add>, %328, %cst_150 [1] : vector<8x8xf32> to vector<8xf32>
    %330 = vector.shape_cast %329 : vector<8xf32> to vector<8x1xf32>
    %331 = tpu.reciprocal %330 {approx = true} : vector<8x1xf32> -> vector<8x1xf32>
    %332 = vector.broadcast %331 : vector<8x1xf32> to vector<8x8xf32>
    %333 = arith.mulf %328, %332 : vector<8x8xf32>
    %cst_151 = arith.constant dense<0.000000e+00> : vector<8x8xf32>
    %334 = tpu.matmul %333, %319, %cst_151 {dimension_numbers = #tpu.dot_dimension_numbers<[1], [0], [0], [1], [0, 0, 1, 1], [], []>} : vector<8x8xf32>, vector<8x8xf32>, vector<8x8xf32> -> vector<8x8xf32>
    %335 = vector.extract_strided_slice %273 {offsets = [16, 0], sizes = [8, 32], strides = [1, 1]} : vector<32x32xf32> to vector<8x32xf32>
    %cst_152 = arith.constant dense<0.000000e+00> : vector<8x32xf32>
    %336 = tpu.matmul %334, %335, %cst_152 {dimension_numbers = #tpu.dot_dimension_numbers<[1], [0], [0], [1], [0, 0, 1, 1], [], []>} : vector<8x8xf32>, vector<8x32xf32>, vector<8x32xf32> -> vector<8x32xf32>
    %337 = arith.addf %316, %336 : vector<8x32xf32>
    %338 = vector.extract_strided_slice %271 {offsets = [0, 24], sizes = [8, 8], strides = [1, 1]} : vector<16x96xf32> to vector<8x8xf32>
    %339 = vector.extract_strided_slice %271 {offsets = [0, 56], sizes = [8, 8], strides = [1, 1]} : vector<16x96xf32> to vector<8x8xf32>
    %340 = vector.extract_strided_slice %271 {offsets = [0, 88], sizes = [8, 8], strides = [1, 1]} : vector<16x96xf32> to vector<8x8xf32>
    %cst_153 = arith.constant dense<0.000000e+00> : vector<8x8xf32>
    %341 = tpu.matmul %338, %339, %cst_153 {dimension_numbers = #tpu.dot_dimension_numbers<[1], [1], [0], [0], [0, 0, 1, 0], [], []>} : vector<8x8xf32>, vector<8x8xf32>, vector<8x8xf32> -> vector<8x8xf32>
    %c3_154 = arith.constant 3 : index
    %c0_155 = arith.constant 0 : index
    %c0_156 = arith.constant 0 : index
    %342 = vector.load %arg4[%c3_154, %c0_155, %c0_156] : memref<4x8x8xf32, #tpu.memory_space<vmem>>, vector<1x8x8xf32>
    %343 = vector.shape_cast %342 : vector<1x8x8xf32> to vector<8x8xf32>
    %344 = arith.addf %341, %343 : vector<8x8xf32>
    %cst_157 = arith.constant dense<0xFF800000> : vector<8xf32>
    %345 = vector.multi_reduction <maximumf>, %344, %cst_157 [1] : vector<8x8xf32> to vector<8xf32>
    %346 = vector.shape_cast %345 : vector<8xf32> to vector<8x1xf32>
    %347 = vector.broadcast %346 : vector<8x1xf32> to vector<8x8xf32>
    %348 = arith.subf %344, %347 : vector<8x8xf32>
    %349 = math.exp %348 : vector<8x8xf32>
    %cst_158 = arith.constant dense<0.000000e+00> : vector<8xf32>
    %350 = vector.multi_reduction <add>, %349, %cst_158 [1] : vector<8x8xf32> to vector<8xf32>
    %351 = vector.shape_cast %350 : vector<8xf32> to vector<8x1xf32>
    %352 = tpu.reciprocal %351 {approx = true} : vector<8x1xf32> -> vector<8x1xf32>
    %353 = vector.broadcast %352 : vector<8x1xf32> to vector<8x8xf32>
    %354 = arith.mulf %349, %353 : vector<8x8xf32>
    %cst_159 = arith.constant dense<0.000000e+00> : vector<8x8xf32>
    %355 = tpu.matmul %354, %340, %cst_159 {dimension_numbers = #tpu.dot_dimension_numbers<[1], [0], [0], [1], [0, 0, 1, 1], [], []>} : vector<8x8xf32>, vector<8x8xf32>, vector<8x8xf32> -> vector<8x8xf32>
    %356 = vector.extract_strided_slice %273 {offsets = [24, 0], sizes = [8, 32], strides = [1, 1]} : vector<32x32xf32> to vector<8x32xf32>
    %cst_160 = arith.constant dense<0.000000e+00> : vector<8x32xf32>
    %357 = tpu.matmul %355, %356, %cst_160 {dimension_numbers = #tpu.dot_dimension_numbers<[1], [0], [0], [1], [0, 0, 1, 1], [], []>} : vector<8x8xf32>, vector<8x32xf32>, vector<8x32xf32> -> vector<8x32xf32>
    %358 = arith.addf %337, %357 : vector<8x32xf32>
    %cst_161 = arith.constant 0.000000e+00 : f32
    %359 = vector.broadcast %cst_161 : f32 to vector<8x32xf32>
    %360 = vector.extract_strided_slice %271 {offsets = [8, 0], sizes = [8, 8], strides = [1, 1]} : vector<16x96xf32> to vector<8x8xf32>
    %361 = vector.extract_strided_slice %271 {offsets = [8, 32], sizes = [8, 8], strides = [1, 1]} : vector<16x96xf32> to vector<8x8xf32>
    %362 = vector.extract_strided_slice %271 {offsets = [8, 64], sizes = [8, 8], strides = [1, 1]} : vector<16x96xf32> to vector<8x8xf32>
    %cst_162 = arith.constant dense<0.000000e+00> : vector<8x8xf32>
    %363 = tpu.matmul %360, %361, %cst_162 {dimension_numbers = #tpu.dot_dimension_numbers<[1], [1], [0], [0], [0, 0, 1, 0], [], []>} : vector<8x8xf32>, vector<8x8xf32>, vector<8x8xf32> -> vector<8x8xf32>
    %c0_163 = arith.constant 0 : index
    %c0_164 = arith.constant 0 : index
    %c0_165 = arith.constant 0 : index
    %364 = vector.load %arg4[%c0_163, %c0_164, %c0_165] : memref<4x8x8xf32, #tpu.memory_space<vmem>>, vector<1x8x8xf32>
    %365 = vector.shape_cast %364 : vector<1x8x8xf32> to vector<8x8xf32>
    %366 = arith.addf %363, %365 : vector<8x8xf32>
    %cst_166 = arith.constant dense<0xFF800000> : vector<8xf32>
    %367 = vector.multi_reduction <maximumf>, %366, %cst_166 [1] : vector<8x8xf32> to vector<8xf32>
    %368 = vector.shape_cast %367 : vector<8xf32> to vector<8x1xf32>
    %369 = vector.broadcast %368 : vector<8x1xf32> to vector<8x8xf32>
    %370 = arith.subf %366, %369 : vector<8x8xf32>
    %371 = math.exp %370 : vector<8x8xf32>
    %cst_167 = arith.constant dense<0.000000e+00> : vector<8xf32>
    %372 = vector.multi_reduction <add>, %371, %cst_167 [1] : vector<8x8xf32> to vector<8xf32>
    %373 = vector.shape_cast %372 : vector<8xf32> to vector<8x1xf32>
    %374 = tpu.reciprocal %373 {approx = true} : vector<8x1xf32> -> vector<8x1xf32>
    %375 = vector.broadcast %374 : vector<8x1xf32> to vector<8x8xf32>
    %376 = arith.mulf %371, %375 : vector<8x8xf32>
    %cst_168 = arith.constant dense<0.000000e+00> : vector<8x8xf32>
    %377 = tpu.matmul %376, %362, %cst_168 {dimension_numbers = #tpu.dot_dimension_numbers<[1], [0], [0], [1], [0, 0, 1, 1], [], []>} : vector<8x8xf32>, vector<8x8xf32>, vector<8x8xf32> -> vector<8x8xf32>
    %378 = vector.extract_strided_slice %273 {offsets = [0, 0], sizes = [8, 32], strides = [1, 1]} : vector<32x32xf32> to vector<8x32xf32>
    %cst_169 = arith.constant dense<0.000000e+00> : vector<8x32xf32>
    %379 = tpu.matmul %377, %378, %cst_169 {dimension_numbers = #tpu.dot_dimension_numbers<[1], [0], [0], [1], [0, 0, 1, 1], [], []>} : vector<8x8xf32>, vector<8x32xf32>, vector<8x32xf32> -> vector<8x32xf32>
    %380 = arith.addf %359, %379 : vector<8x32xf32>
    %381 = vector.extract_strided_slice %271 {offsets = [8, 8], sizes = [8, 8], strides = [1, 1]} : vector<16x96xf32> to vector<8x8xf32>
    %382 = vector.extract_strided_slice %271 {offsets = [8, 40], sizes = [8, 8], strides = [1, 1]} : vector<16x96xf32> to vector<8x8xf32>
    %383 = vector.extract_strided_slice %271 {offsets = [8, 72], sizes = [8, 8], strides = [1, 1]} : vector<16x96xf32> to vector<8x8xf32>
    %cst_170 = arith.constant dense<0.000000e+00> : vector<8x8xf32>
    %384 = tpu.matmul %381, %382, %cst_170 {dimension_numbers = #tpu.dot_dimension_numbers<[1], [1], [0], [0], [0, 0, 1, 0], [], []>} : vector<8x8xf32>, vector<8x8xf32>, vector<8x8xf32> -> vector<8x8xf32>
    %c1_171 = arith.constant 1 : index
    %c0_172 = arith.constant 0 : index
    %c0_173 = arith.constant 0 : index
    %385 = vector.load %arg4[%c1_171, %c0_172, %c0_173] : memref<4x8x8xf32, #tpu.memory_space<vmem>>, vector<1x8x8xf32>
    %386 = vector.shape_cast %385 : vector<1x8x8xf32> to vector<8x8xf32>
    %387 = arith.addf %384, %386 : vector<8x8xf32>
    %cst_174 = arith.constant dense<0xFF800000> : vector<8xf32>
    %388 = vector.multi_reduction <maximumf>, %387, %cst_174 [1] : vector<8x8xf32> to vector<8xf32>
    %389 = vector.shape_cast %388 : vector<8xf32> to vector<8x1xf32>
    %390 = vector.broadcast %389 : vector<8x1xf32> to vector<8x8xf32>
    %391 = arith.subf %387, %390 : vector<8x8xf32>
    %392 = math.exp %391 : vector<8x8xf32>
    %cst_175 = arith.constant dense<0.000000e+00> : vector<8xf32>
    %393 = vector.multi_reduction <add>, %392, %cst_175 [1] : vector<8x8xf32> to vector<8xf32>
    %394 = vector.shape_cast %393 : vector<8xf32> to vector<8x1xf32>
    %395 = tpu.reciprocal %394 {approx = true} : vector<8x1xf32> -> vector<8x1xf32>
    %396 = vector.broadcast %395 : vector<8x1xf32> to vector<8x8xf32>
    %397 = arith.mulf %392, %396 : vector<8x8xf32>
    %cst_176 = arith.constant dense<0.000000e+00> : vector<8x8xf32>
    %398 = tpu.matmul %397, %383, %cst_176 {dimension_numbers = #tpu.dot_dimension_numbers<[1], [0], [0], [1], [0, 0, 1, 1], [], []>} : vector<8x8xf32>, vector<8x8xf32>, vector<8x8xf32> -> vector<8x8xf32>
    %399 = vector.extract_strided_slice %273 {offsets = [8, 0], sizes = [8, 32], strides = [1, 1]} : vector<32x32xf32> to vector<8x32xf32>
    %cst_177 = arith.constant dense<0.000000e+00> : vector<8x32xf32>
    %400 = tpu.matmul %398, %399, %cst_177 {dimension_numbers = #tpu.dot_dimension_numbers<[1], [0], [0], [1], [0, 0, 1, 1], [], []>} : vector<8x8xf32>, vector<8x32xf32>, vector<8x32xf32> -> vector<8x32xf32>
    %401 = arith.addf %380, %400 : vector<8x32xf32>
    %402 = vector.extract_strided_slice %271 {offsets = [8, 16], sizes = [8, 8], strides = [1, 1]} : vector<16x96xf32> to vector<8x8xf32>
    %403 = vector.extract_strided_slice %271 {offsets = [8, 48], sizes = [8, 8], strides = [1, 1]} : vector<16x96xf32> to vector<8x8xf32>
    %404 = vector.extract_strided_slice %271 {offsets = [8, 80], sizes = [8, 8], strides = [1, 1]} : vector<16x96xf32> to vector<8x8xf32>
    %cst_178 = arith.constant dense<0.000000e+00> : vector<8x8xf32>
    %405 = tpu.matmul %402, %403, %cst_178 {dimension_numbers = #tpu.dot_dimension_numbers<[1], [1], [0], [0], [0, 0, 1, 0], [], []>} : vector<8x8xf32>, vector<8x8xf32>, vector<8x8xf32> -> vector<8x8xf32>
    %c2_179 = arith.constant 2 : index
    %c0_180 = arith.constant 0 : index
    %c0_181 = arith.constant 0 : index
    %406 = vector.load %arg4[%c2_179, %c0_180, %c0_181] : memref<4x8x8xf32, #tpu.memory_space<vmem>>, vector<1x8x8xf32>
    %407 = vector.shape_cast %406 : vector<1x8x8xf32> to vector<8x8xf32>
    %408 = arith.addf %405, %407 : vector<8x8xf32>
    %cst_182 = arith.constant dense<0xFF800000> : vector<8xf32>
    %409 = vector.multi_reduction <maximumf>, %408, %cst_182 [1] : vector<8x8xf32> to vector<8xf32>
    %410 = vector.shape_cast %409 : vector<8xf32> to vector<8x1xf32>
    %411 = vector.broadcast %410 : vector<8x1xf32> to vector<8x8xf32>
    %412 = arith.subf %408, %411 : vector<8x8xf32>
    %413 = math.exp %412 : vector<8x8xf32>
    %cst_183 = arith.constant dense<0.000000e+00> : vector<8xf32>
    %414 = vector.multi_reduction <add>, %413, %cst_183 [1] : vector<8x8xf32> to vector<8xf32>
    %415 = vector.shape_cast %414 : vector<8xf32> to vector<8x1xf32>
    %416 = tpu.reciprocal %415 {approx = true} : vector<8x1xf32> -> vector<8x1xf32>
    %417 = vector.broadcast %416 : vector<8x1xf32> to vector<8x8xf32>
    %418 = arith.mulf %413, %417 : vector<8x8xf32>
    %cst_184 = arith.constant dense<0.000000e+00> : vector<8x8xf32>
    %419 = tpu.matmul %418, %404, %cst_184 {dimension_numbers = #tpu.dot_dimension_numbers<[1], [0], [0], [1], [0, 0, 1, 1], [], []>} : vector<8x8xf32>, vector<8x8xf32>, vector<8x8xf32> -> vector<8x8xf32>
    %420 = vector.extract_strided_slice %273 {offsets = [16, 0], sizes = [8, 32], strides = [1, 1]} : vector<32x32xf32> to vector<8x32xf32>
    %cst_185 = arith.constant dense<0.000000e+00> : vector<8x32xf32>
    %421 = tpu.matmul %419, %420, %cst_185 {dimension_numbers = #tpu.dot_dimension_numbers<[1], [0], [0], [1], [0, 0, 1, 1], [], []>} : vector<8x8xf32>, vector<8x32xf32>, vector<8x32xf32> -> vector<8x32xf32>
    %422 = arith.addf %401, %421 : vector<8x32xf32>
    %423 = vector.extract_strided_slice %271 {offsets = [8, 24], sizes = [8, 8], strides = [1, 1]} : vector<16x96xf32> to vector<8x8xf32>
    %424 = vector.extract_strided_slice %271 {offsets = [8, 56], sizes = [8, 8], strides = [1, 1]} : vector<16x96xf32> to vector<8x8xf32>
    %425 = vector.extract_strided_slice %271 {offsets = [8, 88], sizes = [8, 8], strides = [1, 1]} : vector<16x96xf32> to vector<8x8xf32>
    %cst_186 = arith.constant dense<0.000000e+00> : vector<8x8xf32>
    %426 = tpu.matmul %423, %424, %cst_186 {dimension_numbers = #tpu.dot_dimension_numbers<[1], [1], [0], [0], [0, 0, 1, 0], [], []>} : vector<8x8xf32>, vector<8x8xf32>, vector<8x8xf32> -> vector<8x8xf32>
    %c3_187 = arith.constant 3 : index
    %c0_188 = arith.constant 0 : index
    %c0_189 = arith.constant 0 : index
    %427 = vector.load %arg4[%c3_187, %c0_188, %c0_189] : memref<4x8x8xf32, #tpu.memory_space<vmem>>, vector<1x8x8xf32>
    %428 = vector.shape_cast %427 : vector<1x8x8xf32> to vector<8x8xf32>
    %429 = arith.addf %426, %428 : vector<8x8xf32>
    %cst_190 = arith.constant dense<0xFF800000> : vector<8xf32>
    %430 = vector.multi_reduction <maximumf>, %429, %cst_190 [1] : vector<8x8xf32> to vector<8xf32>
    %431 = vector.shape_cast %430 : vector<8xf32> to vector<8x1xf32>
    %432 = vector.broadcast %431 : vector<8x1xf32> to vector<8x8xf32>
    %433 = arith.subf %429, %432 : vector<8x8xf32>
    %434 = math.exp %433 : vector<8x8xf32>
    %cst_191 = arith.constant dense<0.000000e+00> : vector<8xf32>
    %435 = vector.multi_reduction <add>, %434, %cst_191 [1] : vector<8x8xf32> to vector<8xf32>
    %436 = vector.shape_cast %435 : vector<8xf32> to vector<8x1xf32>
    %437 = tpu.reciprocal %436 {approx = true} : vector<8x1xf32> -> vector<8x1xf32>
    %438 = vector.broadcast %437 : vector<8x1xf32> to vector<8x8xf32>
    %439 = arith.mulf %434, %438 : vector<8x8xf32>
    %cst_192 = arith.constant dense<0.000000e+00> : vector<8x8xf32>
    %440 = tpu.matmul %439, %425, %cst_192 {dimension_numbers = #tpu.dot_dimension_numbers<[1], [0], [0], [1], [0, 0, 1, 1], [], []>} : vector<8x8xf32>, vector<8x8xf32>, vector<8x8xf32> -> vector<8x8xf32>
    %441 = vector.extract_strided_slice %273 {offsets = [24, 0], sizes = [8, 32], strides = [1, 1]} : vector<32x32xf32> to vector<8x32xf32>
    %cst_193 = arith.constant dense<0.000000e+00> : vector<8x32xf32>
    %442 = tpu.matmul %440, %441, %cst_193 {dimension_numbers = #tpu.dot_dimension_numbers<[1], [0], [0], [1], [0, 0, 1, 1], [], []>} : vector<8x8xf32>, vector<8x32xf32>, vector<8x32xf32> -> vector<8x32xf32>
    %443 = arith.addf %422, %442 : vector<8x32xf32>
    %444 = tpu.concatenate %358, %443 in 0 : vector<8x32xf32>, vector<8x32xf32> -> vector<16x32xf32>
    %445 = arith.addf %254, %444 : vector<16x32xf32>
    %c1_194 = arith.constant 1 : index
    %c0_195 = arith.constant 0 : index
    %c0_196 = arith.constant 0 : index
    %446 = vector.load %arg14[%c1_194, %c0_195, %c0_196] : memref<2x1x32xf32, #tpu.memory_space<vmem>>, vector<1x1x32xf32>
    %447 = vector.shape_cast %446 : vector<1x1x32xf32> to vector<1x32xf32>
    %448 = arith.mulf %445, %445 : vector<16x32xf32>
    %cst_197 = arith.constant dense<0.000000e+00> : vector<16xf32>
    %449 = vector.multi_reduction <add>, %448, %cst_197 [1] : vector<16x32xf32> to vector<16xf32>
    %450 = vector.shape_cast %449 : vector<16xf32> to vector<16x1xf32>
    %cst_198 = arith.constant 3.200000e+01 : f32
    %451 = vector.broadcast %cst_198 : f32 to vector<16x1xf32>
    %452 = arith.divf %450, %451 : vector<16x1xf32>
    %cst_199 = arith.constant 9.99999997E-7 : f32
    %453 = vector.broadcast %cst_199 : f32 to vector<16x1xf32>
    %454 = arith.addf %452, %453 : vector<16x1xf32>
    %455 = math.rsqrt %454 : vector<16x1xf32>
    %456 = vector.broadcast %455 : vector<16x1xf32> to vector<16x32xf32>
    %457 = arith.mulf %445, %456 : vector<16x32xf32>
    %458 = vector.broadcast %447 : vector<1x32xf32> to vector<16x32xf32>
    %459 = arith.mulf %457, %458 : vector<16x32xf32>
    %c1_200 = arith.constant 1 : index
    %c0_201 = arith.constant 0 : index
    %c0_202 = arith.constant 0 : index
    %460 = vector.load %arg15[%c1_200, %c0_201, %c0_202] : memref<2x32x64xf32, #tpu.memory_space<vmem>>, vector<1x32x64xf32>
    %461 = vector.shape_cast %460 : vector<1x32x64xf32> to vector<32x64xf32>
    %cst_203 = arith.constant dense<0.000000e+00> : vector<16x64xf32>
    %462 = tpu.matmul %459, %461, %cst_203 {dimension_numbers = #tpu.dot_dimension_numbers<[1], [0], [0], [1], [0, 0, 1, 1], [], []>} : vector<16x32xf32>, vector<32x64xf32>, vector<16x64xf32> -> vector<16x64xf32>
    %cst_204 = arith.constant 0.000000e+00 : f32
    %463 = vector.broadcast %cst_204 : f32 to vector<16x64xf32>
    %464 = arith.maximumf %462, %463 : vector<16x64xf32>
    %c1_205 = arith.constant 1 : index
    %c0_206 = arith.constant 0 : index
    %c0_207 = arith.constant 0 : index
    %465 = vector.load %arg16[%c1_205, %c0_206, %c0_207] : memref<2x64x32xf32, #tpu.memory_space<vmem>>, vector<1x64x32xf32>
    %466 = vector.shape_cast %465 : vector<1x64x32xf32> to vector<64x32xf32>
    %cst_208 = arith.constant dense<0.000000e+00> : vector<16x32xf32>
    %467 = tpu.matmul %464, %466, %cst_208 {dimension_numbers = #tpu.dot_dimension_numbers<[1], [0], [0], [1], [0, 0, 1, 1], [], []>} : vector<16x64xf32>, vector<64x32xf32>, vector<16x32xf32> -> vector<16x32xf32>
    %468 = arith.addf %445, %467 : vector<16x32xf32>
    %c0_209 = arith.constant 0 : index
    %c0_210 = arith.constant 0 : index
    %469 = vector.load %arg17[%c0_209, %c0_210] : memref<1x32xf32, #tpu.memory_space<vmem>>, vector<1x32xf32>
    %470 = arith.mulf %468, %468 : vector<16x32xf32>
    %cst_211 = arith.constant dense<0.000000e+00> : vector<16xf32>
    %471 = vector.multi_reduction <add>, %470, %cst_211 [1] : vector<16x32xf32> to vector<16xf32>
    %472 = vector.shape_cast %471 : vector<16xf32> to vector<16x1xf32>
    %cst_212 = arith.constant 3.200000e+01 : f32
    %473 = vector.broadcast %cst_212 : f32 to vector<16x1xf32>
    %474 = arith.divf %472, %473 : vector<16x1xf32>
    %cst_213 = arith.constant 9.99999997E-7 : f32
    %475 = vector.broadcast %cst_213 : f32 to vector<16x1xf32>
    %476 = arith.addf %474, %475 : vector<16x1xf32>
    %477 = math.rsqrt %476 : vector<16x1xf32>
    %478 = vector.broadcast %477 : vector<16x1xf32> to vector<16x32xf32>
    %479 = arith.mulf %468, %478 : vector<16x32xf32>
    %480 = vector.broadcast %469 : vector<1x32xf32> to vector<16x32xf32>
    %481 = arith.mulf %479, %480 : vector<16x32xf32>
    %c0_214 = arith.constant 0 : index
    %c0_215 = arith.constant 0 : index
    %482 = vector.load %arg18[%c0_214, %c0_215] : memref<16x32xf32, #tpu.memory_space<vmem>>, vector<16x32xf32>
    tpu.vector_store %arg18[%c0_214, %c0_215], %481 {strides = array<i32>} : memref<16x32xf32, #tpu.memory_space<vmem>>, vector<16x32xf32>,
    return
  }
  func.func @transform_0(%arg0: i32) -> (i32, i32) {
    %c0_i32 = arith.constant 0 : i32
    %c0_i32_0 = arith.constant 0 : i32
    %c0_i32_1 = arith.constant 0 : i32
    return %c0_i32, %c0_i32_0 : i32, i32
  }
  func.func @transform_1(%arg0: i32) -> (i32, i32) {
    %c0_i32 = arith.constant 0 : i32
    %c0_i32_0 = arith.constant 0 : i32
    %c0_i32_1 = arith.constant 0 : i32
    return %c0_i32, %c0_i32_0 : i32, i32
  }
  func.func @transform_2(%arg0: i32) -> (i32, i32) {
    %c0_i32 = arith.constant 0 : i32
    %c0_i32_0 = arith.constant 0 : i32
    %c0_i32_1 = arith.constant 0 : i32
    return %c0_i32, %c0_i32_0 : i32, i32
  }
  func.func @transform_3(%arg0: i32) -> (i32, i32, i32) {
    %c0_i32 = arith.constant 0 : i32
    %c0_i32_0 = arith.constant 0 : i32
    %c0_i32_1 = arith.constant 0 : i32
    %c0_i32_2 = arith.constant 0 : i32
    return %c0_i32, %c0_i32_0, %c0_i32_1 : i32, i32, i32
  }
  func.func @transform_4(%arg0: i32) -> (i32, i32) {
    %c0_i32 = arith.constant 0 : i32
    %c0_i32_0 = arith.constant 0 : i32
    %c0_i32_1 = arith.constant 0 : i32
    return %c0_i32, %c0_i32_0 : i32, i32
  }
  func.func @transform_5(%arg0: i32) -> (i32, i32) {
    %c0_i32 = arith.constant 0 : i32
    %c0_i32_0 = arith.constant 0 : i32
    %c0_i32_1 = arith.constant 0 : i32
    return %c0_i32, %c0_i32_0 : i32, i32
  }
  func.func @transform_6(%arg0: i32) -> (i32, i32) {
    %c0_i32 = arith.constant 0 : i32
    %c0_i32_0 = arith.constant 0 : i32
    %c0_i32_1 = arith.constant 0 : i32
    return %c0_i32, %c0_i32_0 : i32, i32
  }
  func.func @transform_7(%arg0: i32) -> (i32, i32) {
    %c0_i32 = arith.constant 0 : i32
    %c0_i32_0 = arith.constant 0 : i32
    %c0_i32_1 = arith.constant 0 : i32
    return %c0_i32, %c0_i32_0 : i32, i32
  }
  func.func @transform_8(%arg0: i32) -> (i32, i32) {
    %c0_i32 = arith.constant 0 : i32
    %c0_i32_0 = arith.constant 0 : i32
    %c0_i32_1 = arith.constant 0 : i32
    return %c0_i32, %c0_i32_0 : i32, i32
  }
  func.func @transform_9(%arg0: i32) -> (i32, i32) {
    %c0_i32 = arith.constant 0 : i32
    %c0_i32_0 = arith.constant 0 : i32
    %c0_i32_1 = arith.constant 0 : i32
    return %c0_i32, %c0_i32_0 : i32, i32
  }
  func.func @transform_10(%arg0: i32) -> (i32, i32, i32) {
    %c0_i32 = arith.constant 0 : i32
    %c0_i32_0 = arith.constant 0 : i32
    %c0_i32_1 = arith.constant 0 : i32
    %c0_i32_2 = arith.constant 0 : i32
    return %c0_i32, %c0_i32_0, %c0_i32_1 : i32, i32, i32
  }
  func.func @transform_11(%arg0: i32) -> (i32, i32, i32) {
    %c0_i32 = arith.constant 0 : i32
    %c0_i32_0 = arith.constant 0 : i32
    %c0_i32_1 = arith.constant 0 : i32
    %c0_i32_2 = arith.constant 0 : i32
    return %c0_i32, %c0_i32_0, %c0_i32_1 : i32, i32, i32
  }
  func.func @transform_12(%arg0: i32) -> (i32, i32, i32) {
    %c0_i32 = arith.constant 0 : i32
    %c0_i32_0 = arith.constant 0 : i32
    %c0_i32_1 = arith.constant 0 : i32
    %c0_i32_2 = arith.constant 0 : i32
    return %c0_i32, %c0_i32_0, %c0_i32_1 : i32, i32, i32
  }
  func.func @transform_13(%arg0: i32) -> (i32, i32, i32) {
    %c0_i32 = arith.constant 0 : i32
    %c0_i32_0 = arith.constant 0 : i32
    %c0_i32_1 = arith.constant 0 : i32
    %c0_i32_2 = arith.constant 0 : i32
    return %c0_i32, %c0_i32_0, %c0_i32_1 : i32, i32, i32
  }
  func.func @transform_14(%arg0: i32) -> (i32, i32, i32) {
    %c0_i32 = arith.constant 0 : i32
    %c0_i32_0 = arith.constant 0 : i32
    %c0_i32_1 = arith.constant 0 : i32
    %c0_i32_2 = arith.constant 0 : i32
    return %c0_i32, %c0_i32_0, %c0_i32_1 : i32, i32, i32
  }
  func.func @transform_15(%arg0: i32) -> (i32, i32, i32) {
    %c0_i32 = arith.constant 0 : i32
    %c0_i32_0 = arith.constant 0 : i32
    %c0_i32_1 = arith.constant 0 : i32
    %c0_i32_2 = arith.constant 0 : i32
    return %c0_i32, %c0_i32_0, %c0_i32_1 : i32, i32, i32
  }
  func.func @transform_16(%arg0: i32) -> (i32, i32) {
    %c0_i32 = arith.constant 0 : i32
    %c0_i32_0 = arith.constant 0 : i32
    %c0_i32_1 = arith.constant 0 : i32
    return %c0_i32, %c0_i32_0 : i32, i32
  }
  func.func @transform_17(%arg0: i32) -> (i32, i32) {
    %c0_i32 = arith.constant 0 : i32
    %c0_i32_0 = arith.constant 0 : i32
    %c0_i32_1 = arith.constant 0 : i32
    return %c0_i32, %c0_i32_0 : i32, i32
  }
}

</mosaic_0001>

<bundles_post_ra>
// kernel: visual_embedding_forward.1
= control target key start
LH: loop header
LB: loop body
LE: loop exit
PB: predicated region body
PF: predicated region fallthrough
CT: control target
= control target key end

     0   :  { %s3334_s0 = inlined_call_operand.vmem [shape: f32[16,512], index: 0, kind: input, shape index: {}]   ;;  %s3335_s1 = inlined_call_operand.vmem [shape: f32[16,5], index: 1, kind: input, shape index: {}]   ;;  %s3336_s2 = inlined_call_operand.vmem [shape: f32[16,32], index: 2, kind: input, shape index: {}]   ;;  %s3337_s3 = inlined_call_operand.vmem [shape: f32[4,8,8], index: 3, kind: input, shape index: {}]   ;;  %s3338_s4 = inlined_call_operand.vmem [shape: f32[512,32], index: 4, kind: input, shape index: {}]   ;;  %s3339_s5 = inlined_call_operand.vmem [shape: f32[1,32], index: 5, kind: input, shape index: {}]   ;;  %s3340_s6 = inlined_call_operand.vmem [shape: f32[1,32], index: 6, kind: input, shape index: {}]   ;;  %s3341_s7 = inlined_call_operand.vmem [shape: f32[5,32], index: 7, kind: input, shape index: {}]   ;;  %s3342_s8 = inlined_call_operand.vmem [shape: f32[1,32], index: 8, kind: input, shape index: {}]   ;;  %s3343_s9 = inlined_call_operand.vmem [shape: f32[1,32], index: 9, kind: input, shape index: {}]   ;;  %s3344_s10 = inlined_call_operand.vmem [shape: f32[2,1,32], index: 10, kind: input, shape index: {}]   ;;  %s3345_s11 = inlined_call_operand.vmem [shape: f32[2,32,96], index: 11, kind: input, shape index: {}]   ;;  %s3346_s12 = inlined_call_operand.vmem [shape: f32[2,32,32], index: 12, kind: input, shape index: {}]   ;;  %s3347_s13 = inlined_call_operand.vmem [shape: f32[2,1,32], index: 13, kind: input, shape index: {}]   ;;  %s3348_s14 = inlined_call_operand.vmem [shape: f32[2,32,64], index: 14, kind: input, shape index: {}]   ;;  %s3349_s15 = inlined_call_operand.vmem [shape: f32[2,64,32], index: 15, kind: input, shape index: {}]   ;;  %s3350_s16 = inlined_call_operand.vmem [shape: f32[1,32], index: 16, kind: input, shape index: {}]   ;;  %s3351_s17 = inlined_call_operand.hbm [shape: f32[16,32], index: 17, kind: output, shape index: {}]  }
   0x1   :  { %3354 = sst [smem:[#allocation5_spill]] %s3334_s0 }
   0x2   :  { %3355 = sst [smem:[#allocation6_spill]] %s3335_s1 }
   0x3   :  { %v80_v0 = vld [vmem:[%s3338_s4 + $0x78] sm:$0xff]  ;;  %v79_v2 = vld [vmem:[%s3338_s4 + $0x70] sm:$0xff]  ;;  %v78_v6 = vld [vmem:[%s3338_s4 + $0x68] sm:$0xff] }
   0x4   :  { %v112_v1 = vld [vmem:[%s3338_s4 + $0x178] sm:$0xff]  ;;  %133 = vmatpush.msra.mxu0 %v80_v0  ;;  %v111_v4 = vld [vmem:[%s3338_s4 + $0x170] sm:$0xff]  ;;  %v110_v8 = vld [vmem:[%s3338_s4 + $0x168] sm:$0xff] }
   0x5   :  { %179 = vmatpush.msra.mxu2 %v112_v1  ;;  %v96_v3 = vld [vmem:[%s3338_s4 + $0xf8] sm:$0xff]  ;;  %v95_v7 = vld [vmem:[%s3338_s4 + $0xf0] sm:$0xff]  ;;  %v94_v10 = vld [vmem:[%s3338_s4 + $0xe8] sm:$0xff] }
   0x6   :  { %v128_v5 = vld [vmem:[%s3338_s4 + $0x1f8] sm:$0xff]  ;;  %156 = vmatpush.msra.mxu1 %v96_v3  ;;  %134 = vmatpush.msra.mxu0 %v79_v2  ;;  %v127_v9 = vld [vmem:[%s3338_s4 + $0x1f0] sm:$0xff]  ;;  %v77_v11 = vld [vmem:[%s3338_s4 + $0x60] sm:$0xff] }
   0x7   :  { %202 = vmatpush.msra.mxu3 %v128_v5  ;;  %180 = vmatpush.msra.mxu2 %v111_v4  ;;  %v109_v12 = vld [vmem:[%s3338_s4 + $0x160] sm:$0xff]  ;;  %v126_v13 = vld [vmem:[%s3338_s4 + $0x1e8] sm:$0xff]  ;;  %v76_v16 = vld [vmem:[%s3338_s4 + $0x58] sm:$0xff] }
   0x8   :  { %157 = vmatpush.msra.mxu1 %v95_v7  ;;  %135 = vmatpush.msra.mxu0 %v78_v6  ;;  %v93_v14 = vld [vmem:[%s3338_s4 + $0xe0] sm:$0xff]  ;;  %v108_v17 = vld [vmem:[%s3338_s4 + $0x158] sm:$0xff]  ;;  %v75_v20 = vld [vmem:[%s3338_s4 + $0x50] sm:$0xff] }
   0x9   :  { %203 = vmatpush.msra.mxu3 %v127_v9  ;;  %181 = vmatpush.msra.mxu2 %v110_v8  ;;  %v125_v15 = vld [vmem:[%s3338_s4 + $0x1e0] sm:$0xff]  ;;  %v92_v18 = vld [vmem:[%s3338_s4 + $0xd8] sm:$0xff]  ;;  %v107_v21 = vld [vmem:[%s3338_s4 + $0x150] sm:$0xff] }
   0xa   :  { %158 = vmatpush.msra.mxu1 %v94_v10  ;;  %136 = vmatpush.msra.mxu0 %v77_v11  ;;  %v124_v19 = vld [vmem:[%s3338_s4 + $0x1d8] sm:$0xff]  ;;  %v91_v22 = vld [vmem:[%s3338_s4 + $0xd0] sm:$0xff]  ;;  %v74_v24 = vld [vmem:[%s3338_s4 + $0x48] sm:$0xff] }
   0xb   :  { %204 = vmatpush.msra.mxu3 %v126_v13  ;;  %182 = vmatpush.msra.mxu2 %v109_v12  ;;  %v123_v23 = vld [vmem:[%s3338_s4 + $0x1d0] sm:$0xff]  ;;  %v106_v25 = vld [vmem:[%s3338_s4 + $0x148] sm:$0xff]  ;;  %v73_v28 = vld [vmem:[%s3338_s4 + $0x40] sm:$0xff] }
   0xc   :  { %159 = vmatpush.msra.mxu1 %v93_v14  ;;  %137 = vmatpush.msra.mxu0 %v76_v16  ;;  %v90_v26 = vld [vmem:[%s3338_s4 + $0xc8] sm:$0xff]  ;;  %v105_v29 = vld [vmem:[%s3338_s4 + $0x140] sm:$0xff]  ;;  %v72_v32 = vld [vmem:[%s3338_s4 + $0x38] sm:$0xff] }
   0xd   :  { %205 = vmatpush.msra.mxu3 %v125_v15  ;;  %183 = vmatpush.msra.mxu2 %v108_v17  ;;  %v122_v27 = vld [vmem:[%s3338_s4 + $0x1c8] sm:$0xff]  ;;  %v89_v30 = vld [vmem:[%s3338_s4 + $0xc0] sm:$0xff]  ;;  %v104_v33 = vld [vmem:[%s3338_s4 + $0x138] sm:$0xff] }
   0xe   :  { %160 = vmatpush.msra.mxu1 %v92_v18  ;;  %138 = vmatpush.msra.mxu0 %v75_v20  ;;  %v121_v31 = vld [vmem:[%s3338_s4 + $0x1c0] sm:$0xff]  ;;  %v88_v34 = vld [vmem:[%s3338_s4 + $0xb8] sm:$0xff]  ;;  %v71_v36 = vld [vmem:[%s3338_s4 + $0x30] sm:$0xff] }
   0xf   :  { %206 = vmatpush.msra.mxu3 %v124_v19  ;;  %184 = vmatpush.msra.mxu2 %v107_v21  ;;  %v120_v35 = vld [vmem:[%s3338_s4 + $0x1b8] sm:$0xff]  ;;  %v103_v37 = vld [vmem:[%s3338_s4 + $0x130] sm:$0xff]  ;;  %v70_v40 = vld [vmem:[%s3338_s4 + $0x28] sm:$0xff] }
  0x10   :  { %161 = vmatpush.msra.mxu1 %v91_v22  ;;  %139 = vmatpush.msra.mxu0 %v74_v24  ;;  %v87_v38 = vld [vmem:[%s3338_s4 + $0xb0] sm:$0xff]  ;;  %v102_v41 = vld [vmem:[%s3338_s4 + $0x128] sm:$0xff]  ;;  %v69_v44 = vld [vmem:[%s3338_s4 + $0x20] sm:$0xff] }
  0x11   :  { %207 = vmatpush.msra.mxu3 %v123_v23  ;;  %185 = vmatpush.msra.mxu2 %v106_v25  ;;  %v119_v39 = vld [vmem:[%s3338_s4 + $0x1b0] sm:$0xff]  ;;  %v86_v42 = vld [vmem:[%s3338_s4 + $0xa8] sm:$0xff]  ;;  %v101_v45 = vld [vmem:[%s3338_s4 + $0x120] sm:$0xff] }
  0x12   :  { %162 = vmatpush.msra.mxu1 %v90_v26  ;;  %140 = vmatpush.msra.mxu0 %v73_v28  ;;  %v118_v43 = vld [vmem:[%s3338_s4 + $0x1a8] sm:$0xff]  ;;  %v68_v46 = vld [vmem:[%s3338_s4 + $0x18] sm:$0xff]  ;;  %v85_v47 = vld [vmem:[%s3338_s4 + $0xa0] sm:$0xff] }
  0x13   :  { %208 = vmatpush.msra.mxu3 %v122_v27  ;;  %186 = vmatpush.msra.mxu2 %v105_v29  ;;  %v117_v48 = vld [vmem:[%s3338_s4 + $0x1a0] sm:$0xff]  ;;  %v100_v49 = vld [vmem:[%s3338_s4 + $0x118] sm:$0xff]  ;;  %v67_v50 = vld [vmem:[%s3338_s4 + $0x10] sm:$0xff] }
  0x14   :  { %163 = vmatpush.msra.mxu1 %v89_v30  ;;  %141 = vmatpush.msra.mxu0 %v72_v32  ;;  %v84_v51 = vld [vmem:[%s3338_s4 + $0x98] sm:$0xff]  ;;  %v99_v52 = vld [vmem:[%s3338_s4 + $0x110] sm:$0xff]  ;;  %v66_v55 = vld [vmem:[%s3338_s4 + $0x8] sm:$0xff] }
  0x15   :  { %209 = vmatpush.msra.mxu3 %v121_v31  ;;  %187 = vmatpush.msra.mxu2 %v104_v33  ;;  %v116_v53 = vld [vmem:[%s3338_s4 + $0x198] sm:$0xff]  ;;  %v83_v54 = vld [vmem:[%s3338_s4 + $0x90] sm:$0xff]  ;;  %v98_v56 = vld [vmem:[%s3338_s4 + $0x108] sm:$0xff] }
  0x16   :  { %164 = vmatpush.msra.mxu1 %v88_v34  ;;  %142 = vmatpush.msra.mxu0 %v71_v36  ;;  %v115_v57 = vld [vmem:[%s3338_s4 + $0x190] sm:$0xff]  ;;  %v82_v58 = vld [vmem:[%s3338_s4 + $0x88] sm:$0xff]  ;;  %v65_v60 = vld [vmem:[%s3338_s4] sm:$0xff] }
  0x17   :  { %210 = vmatpush.msra.mxu3 %v120_v35  ;;  %188 = vmatpush.msra.mxu2 %v103_v37  ;;  %v114_v59 = vld [vmem:[%s3338_s4 + $0x188] sm:$0xff]  ;;  %v97_v61 = vld [vmem:[%s3338_s4 + $0x100] sm:$0xff] }
  0x18   :  { %165 = vmatpush.msra.mxu1 %v87_v38  ;;  %143 = vmatpush.msra.mxu0 %v70_v40 }
  0x19   :  { %211 = vmatpush.msra.mxu3 %v119_v39  ;;  %189 = vmatpush.msra.mxu2 %v102_v41 }
  0x1a   :  { %166 = vmatpush.msra.mxu1 %v86_v42  ;;  %144 = vmatpush.msra.mxu0 %v69_v44 }
  0x1b   :  { %212 = vmatpush.msra.mxu3 %v118_v43  ;;  %190 = vmatpush.msra.mxu2 %v101_v45 }
  0x1c   :  { %167 = vmatpush.msra.mxu1 %v85_v47  ;;  %145 = vmatpush.msra.mxu0 %v68_v46 }
  0x1d   :  { %213 = vmatpush.msra.mxu3 %v117_v48  ;;  %191 = vmatpush.msra.mxu2 %v100_v49 }
  0x1e   :  { %168 = vmatpush.msra.mxu1 %v84_v51  ;;  %146 = vmatpush.msra.mxu0 %v67_v50 }
  0x1f   :  { %214 = vmatpush.msra.mxu3 %v116_v53  ;;  %192 = vmatpush.msra.mxu2 %v99_v52 }
  0x20   :  { %169 = vmatpush.msra.mxu1 %v83_v54 }
  0x21   :  { %215 = vmatpush.msra.mxu3 %v115_v57 }
  0x22   :  { %22 = vsyncpa [#allocation3], 0  ;;  %147 = vmatpush.msra.mxu0 %v66_v55  ;;  %193 = vmatpush.msra.mxu2 %v98_v56  ;;  %s3356_s0 = sld [smem:[#allocation5_spill]]  ;;  %v81_v0 = vld [vmem:[%s3338_s4 + $0x80] sm:$0xff]  ;;  %vm287_vm0 = vcmask 1044480   ;;  %vm280_vm1 = vcmask 39936  }
  0x23   :  { %170 = vmatpush.msra.mxu1 %v82_v58  ;;  %216 = vmatpush.msra.mxu3 %v114_v59  ;;  %v113_v1 = vld [vmem:[%s3338_s4 + $0x180] sm:$0xff]  ;;  %s3357_s22 = sld [smem:[#allocation6_spill]]  ;;  %vm228_vm2 = vcmask 261120   ;;  %v2483_v28 = vmov 32.0   ;;  %s2486_s25 = smov 96   ;;  %vm441_vm13 = vcmask 64512  }
  0x24   :  { %148 = vmatpush.msra.mxu0 %v65_v60  ;;  %194 = vmatpush.msra.mxu2 %v97_v61  ;;  %v275_v4 = vld [vmem:[%s3341_s7] sm:$0x1f]  ;;  %2361 = vrcp.f32 %v2483_v28  ;;  %s2489_s4 = smov 64   ;;  %s2490_s18 = smov 56  }
  0x25   :  { %171 = vmatpush.msra.mxu1 %v81_v0  ;;  %217 = vmatpush.msra.mxu3 %v113_v1  ;;  %v2352_v10 = vld [vmem:[%s3339_s5] ss:$0 sm:$0xff]  ;;  %s2487_s5 = smov 120   ;;  %s2491_s19 = smov 48  }
  0x26   :  { %2233 = vmatpush.msk.msrb.mxu0 %vm287_vm0, %v275_v4  ;;  %v2820_v23 = vld [vmem:[%s3342_s8] ss:$0 sm:$0xff]  ;;  %v401_v4 = vld [vmem:[%s3345_s11 + $0x8] sm:$0xff]  ;;  %s2488_s8 = smov 112   ;;  %s2492_s1 = smov 72  }
  0x27   :  { %v2831_v55 = vld [vmem:[%s3340_s6] ss:$0 sm:$0xff]  ;;  %s2493_s7 = smov 104  }
  0x28   :  { %v57_v62 = vld [vmem:[%s3356_s0] sm:$0xff]  ;;  %v59_v63 = vld [vmem:[%s3356_s0 + $0x10] sm:$0xff]  ;;  %v58_v2 = vld [vmem:[%s3356_s0 + $0x8] sm:$0xff] }
  0x29   :  { %v60_v3 = vld [vmem:[%s3356_s0 + $0x18] sm:$0xff]  ;;  %149 = vmatmul.f32.vlgmr.msra.gmra.mxu0 %v57_v62  ;;  %195 = vmatmul.f32.vlgmr.msra.gmra.mxu2 %v59_v63  ;;  %v61_v5 = vld [vmem:[%s3356_s0 + $0x20] sm:$0xff]  ;;  %v63_v6 = vld [vmem:[%s3356_s0 + $0x30] sm:$0xff] }
  0x2a   :  { %172 = vmatmul.f32.vlgmr.msra.gmra.mxu1 %v58_v2  ;;  %218 = vmatmul.f32.vlgmr.msra.gmra.mxu3 %v60_v3  ;;  %v62_v7 = vld [vmem:[%s3356_s0 + $0x28] sm:$0xff]  ;;  %v64_v8 = vld [vmem:[%s3356_s0 + $0x38] sm:$0xff]  ;;  %v273_v9 = vld [vmem:[%s3357_s22] sm:$0xff]  ;;  %v2362_v29 = vpop.eup %2361  ;;  %s2485_s0 = smov 88  }
  0x2b   :  { %v236_v30 = vmul.f32 32.0, %v2362_v29  ;;  %vm240_vm3 = vweird.f32 %v2362_v29  ;;  %v2836_v56 = vld [vmem:[%s3343_s9] ss:$0 sm:$0xff]  ;;  %v403_v2 = vld [vmem:[%s3345_s11 + $0x18] sm:$0xff]  ;;  %v402_v3 = vld [vmem:[%s3345_s11 + $0x10] sm:$0xff] }
  0x2c   :  { %v356_v61 = vld [vmem:[%s3336_s2] sm:$0xff]  ;;  %422 = vmatpush.msrb.mxu1 %v403_v2  ;;  %v357_v2 = vld [vmem:[%s3336_s2 + $0x8] sm:$0xff]  ;;  %s2494_s2 = smov 40  }
  0x2d   :  { %v237_v31 = vsub.f32 1.0, %v236_v30 }
  0x2e   :  { %423 = vmatpush.msrb.mxu1 %v402_v3 }
  0x2f   :  { %v238_v32 = vmul.f32 %v2362_v29, %v237_v31 }
  0x30   :  { %424 = vmatpush.msrb.mxu1 %v401_v4 }
  0x31   :  { %152 = vmatmul.f32.gmra.mxu0 %v61_v5  ;;  %198 = vmatmul.f32.gmra.mxu2 %v63_v6  ;;  %v239_v33 = vadd.f32 %v2362_v29, %v238_v32  ;;  %v400_v5 = vld [vmem:[%s3345_s11] sm:$0xff]  ;;  %v274_v6 = vld [vmem:[%s3357_s22 + $0x8] sm:$0xff]  ;;  %s2484_s22 = smov 80  }
  0x32   :  { %175 = vmatmul.f32.gmra.mxu1 %v62_v7  ;;  %221 = vmatmul.f32.gmra.mxu3 %v64_v8 }
  0x33   :  { %v2824_v34 = vsel %vm240_vm3, %v2362_v29, %v239_v33  ;;  %425 = vmatpush.msrb.mxu1 %v400_v5 }
  0x39   :  { %2234 = vmatmul.msk.f32.vlgmr.msrb.gmra.mxu0 %vm280_vm1, %v273_v9 }
  0x41   :  { %2235 = vmatmul.msk.f32.gmra.mxu0 %vm280_vm1, %v274_v6 }
  0xa6   :  { %v150_v11 = vpop.f32.mrf.mxu0 }
  0xa7   :  { %v151_v12 = vadd.f32 %v2352_v10, %v150_v11  ;;  %v173_v13 = vpop.f32.mrf.mxu1 }
  0xa9   :  { %v174_v14 = vadd.f32 %v173_v13, %v151_v12 }
  0xac   :  { %v196_v15 = vpop.f32.mrf.mxu2 }
  0xad   :  { %v197_v16 = vadd.f32 %v196_v15, %v174_v14  ;;  %v219_v18 = vpop.f32.mrf.mxu3 }
  0xae   :  { %v153_v17 = vpop.f32.mrf.mxu0 }
  0xaf   :  { %v2814_v19 = vadd.f32 %v2352_v10, %v153_v17  ;;  %v220_v20 = vadd.f32 %v219_v18, %v197_v16  ;;  %v2868_v16 = vld [vmem:[%s3344_s10] ss:$0 sm:$0xff] }
  0xb1   :  { %v226_v21 = vmul.f32 %v220_v20, %v220_v20 }
  0xb3   :  { %v229_v22 = vsel %vm228_vm2, %v226_v21, 0.0  ;;  %v176_v21 = vpop.f32.mrf.mxu1 }
  0xb4   :  { %230 = vadd.xlane.f32.xlu0 %v229_v22  ;;  %v199_v28 = vpop.f32.mrf.mxu2  ;;  %v177_v29 = vadd.f32 %v176_v21, %v2814_v19 }
  0xb5   :  { %v222_v31 = vpop.f32.mrf.mxu3 }
  0xb6   :  { %v308_v24 = vpop.f32.mrf.mxu0  ;;  %v200_v30 = vadd.f32 %v199_v28, %v177_v29 }
  0xb7   :  { %v309_v25 = vadd.f32 %v2820_v23, %v308_v24 }
  0xb8   :  { %v223_v32 = vadd.f32 %v222_v31, %v200_v30 }
  0xb9   :  { %v315_v26 = vmul.f32 %v309_v25, %v309_v25 }
  0xba   :  { %v227_v33 = vmul.f32 %v223_v32, %v223_v32 }
  0xbb   :  { %v317_v27 = vsel %vm228_vm2, %v315_v26, 0.0 }
  0xbc   :  { %318 = vadd.xlane.f32.xlu0 %v317_v27 }
  0xbe   :  { %v311_v24 = vpop.f32.mrf.mxu0 }
 0x127   :  { %v231_v35 = vpop.xlane.xlu0 %230 }
 0x128   :  { %v242_v36 = vmul.f32 %v2824_v34, %v231_v35  ;;  %v232_v35 = vsel %vm228_vm2, %v227_v33, 0.0 }
 0x12a   :  { %v244_v37 = vadd.f32 1e-06, %v242_v36 }
 0x12c   :  { %2363 = vrsqrt.f32 %v244_v37  ;;  %vm252_vm5 = vweird.f32 %v244_v37 }
 0x12f   :  { %v319_v38 = vpop.xlane.xlu0 %318 }
 0x130   :  { %v323_v39 = vmul.f32 %v319_v38, %v2824_v34 }
 0x132   :  { %v2364_v40 = vpop.eup %2363  ;;  %v325_v41 = vadd.f32 1e-06, %v323_v39 }
 0x133   :  { %v247_v42 = vmul.f32 %v2364_v40, %v244_v37  ;;  %vm253_vm4 = vweird.f32 %v2364_v40 }
 0x134   :  { %2365 = vrsqrt.f32 %v325_v41  ;;  %vm254_vm6 = vmor %vm252_vm5, %vm253_vm4  ;;  %vm333_vm8 = vweird.f32 %v325_v41 }
 0x135   :  { %v248_v43 = vmul.f32 %v2364_v40, %v247_v42 }
 0x137   :  { %v249_v44 = vmul.f32 0.5, %v248_v43 }
 0x139   :  { %v250_v45 = vsub.f32 1.5, %v249_v44 }
 0x13a   :  { %v2366_v46 = vpop.eup %2365 }
 0x13b   :  { %v328_v47 = vmul.f32 %v2366_v46, %v325_v41  ;;  %v251_v48 = vmul.f32 %v2364_v40, %v250_v45  ;;  %vm334_vm7 = vweird.f32 %v2366_v46 }
 0x13c   :  { %vm335_vm9 = vmor %vm333_vm8, %vm334_vm7 }
 0x13d   :  { %v329_v49 = vmul.f32 %v2366_v46, %v328_v47  ;;  %v255_v51 = vsel %vm254_vm6, %v2364_v40, %v251_v48 }
 0x13e   :  { %v266_v54 = vmul.f32 %v255_v51, %v220_v20 }
 0x13f   :  { %v330_v50 = vmul.f32 0.5, %v329_v49 }
 0x140   :  { %v271_v59 = vmul.f32 %v2831_v55, %v266_v54 }
 0x141   :  { %v331_v52 = vsub.f32 1.5, %v330_v50 }
 0x143   :  { %v332_v53 = vmul.f32 %v2366_v46, %v331_v52 }
 0x145   :  { %v336_v57 = vsel %vm335_vm9, %v2366_v46, %v332_v53 }
 0x146   :  { %v347_v58 = vmul.f32 %v336_v57, %v309_v25  ;;  %v312_v25 = vadd.f32 %v2820_v23, %v311_v24 }
 0x148   :  { %v352_v60 = vmul.f32 %v2836_v56, %v347_v58  ;;  %v316_v26 = vmul.f32 %v312_v25, %v312_v25 }
 0x14a   :  { %v354_v62 = vadd.f32 %v352_v60, %v271_v59  ;;  %v320_v27 = vsel %vm228_vm2, %v316_v26, 0.0 }
 0x14c   :  { %v2843_v63 = vadd.f32 %v356_v61, %v354_v62 }
 0x14e   :  { %v361_v0 = vmul.f32 %v2843_v63, %v2843_v63 }
 0x150   :  { %v363_v1 = vsel %vm228_vm2, %v361_v0, 0.0 }
 0x151   :  { %364 = vadd.xlane.f32.xlu1 %v363_v1 }
 0x1c4   :  { %v365_v7 = vpop.xlane.xlu1 %364 }
 0x1c5   :  { %v369_v8 = vmul.f32 %v365_v7, %v2824_v34 }
 0x1c7   :  { %v371_v9 = vadd.f32 1e-06, %v369_v8 }
 0x1c9   :  { %2367 = vrsqrt.f32 %v371_v9  ;;  %vm379_vm11 = vweird.f32 %v371_v9 }
 0x1cf   :  { %v2368_v10 = vpop.eup %2367 }
 0x1d0   :  { %v374_v11 = vmul.f32 %v2368_v10, %v371_v9  ;;  %vm380_vm10 = vweird.f32 %v2368_v10  ;;  %v2920_v9 = vld [vmem:[%s3337_s3 + $0x8] sm:$0xff] }
 0x1d1   :  { %vm381_vm12 = vmor %vm379_vm11, %vm380_vm10 }
 0x1d2   :  { %v375_v12 = vmul.f32 %v2368_v10, %v374_v11 }
 0x1d4   :  { %v376_v13 = vmul.f32 0.5, %v375_v12 }
 0x1d6   :  { %v377_v14 = vsub.f32 1.5, %v376_v13  ;;  %v2927_v13 = vld [vmem:[%s3337_s3 + $0x10] sm:$0xff] }
 0x1d8   :  { %v378_v15 = vmul.f32 %v2368_v10, %v377_v14 }
 0x1da   :  { %v382_v17 = vsel %vm381_vm12, %v2368_v10, %v378_v15 }
 0x1db   :  { %v393_v18 = vmul.f32 %v382_v17, %v2843_v63 }
 0x1dd   :  { %v398_v20 = vmul.f32 %v2868_v16, %v393_v18 }
 0x1df   :  { %2236 = vmatmul.msk.f32.vlgmr.msrb.gmra.mxu1 %vm228_vm2, %v398_v20 }
 0x25c   :  { %v2873_v22 = vpop.f32.mrf.mxu1 }
 0x25d   :  { %620 = vrot.lane.b32.xlu0 %v2873_v22, %s2484_s22  ;;  %507 = vrot.lane.b32.xlu2 %v2873_v22, %s2485_s0 }
 0x25e   :  { %439 = vrot.lane.b32.xlu1 %v2873_v22, %s2486_s25 }
 0x265   :  { %505 = vrot.lane.b32.xlu2 %v2873_v22, %s2487_s5 }
 0x26d   :  { %618 = vrot.lane.b32.xlu2 %v2873_v22, %s2488_s8 }
 0x288   :  { %321 = vadd.xlane.f32.xlu1 %v320_v27 }
 0x296   :  { %233 = vadd.xlane.f32.xlu2 %v232_v35 }
 0x2b7   :  { %v508_v36 = vpop.permute.xlu2 %507 }
 0x2bf   :  { %v506_v19 = vpop.permute.xlu2 %505 }
 0x2c7   :  { %v619_v38 = vpop.permute.xlu2 %618 }
 0x2cf   :  { %v621_v23 = vpop.permute.xlu0 %620 }
 0x2d0   :  { %v440_v37 = vpop.permute.xlu1 %439 }
 0x2d1   :  { %2238 = vmatpush.xpose.msk.msrb.mxu2 %vm441_vm13, %v440_v37 }
 0x2d4   :  { %2239 = vmatmul.msk.f32.vlgmr.msrb.gmra.mxu2 %vm441_vm13, %v2873_v22 }
 0x2d5   :  { %2242 = vmatpush.xpose.msk.msra.mxu2 %vm441_vm13, %v508_v36 }
 0x2d9   :  { %2248 = vmatpush.xpose.msk.msrb.mxu2 %vm441_vm13, %v621_v23 }
 0x2dc   :  { %2243 = vmatmul.msk.f32.vlgmr.msra.gmra.mxu2 %vm441_vm13, %v506_v19 }
 0x2e4   :  { %2249 = vmatmul.msk.f32.vlgmr.msrb.gmra.mxu2 %vm441_vm13, %v619_v38 }
 0x2fb   :  { %v322_v39 = vpop.xlane.xlu1 %321 }
 0x2fc   :  { %v324_v40 = vmul.f32 %v322_v39, %v2824_v34 }
 0x2fe   :  { %v326_v41 = vadd.f32 1e-06, %v324_v40 }
 0x300   :  { %2369 = vrsqrt.f32 %v326_v41  ;;  %vm343_vm14 = vweird.f32 %v326_v41 }
 0x306   :  { %v2370_v42 = vpop.eup %2369 }
 0x307   :  { %v338_v43 = vmul.f32 %v2370_v42, %v326_v41  ;;  %vm344_vm15 = vweird.f32 %v2370_v42 }
 0x308   :  { %vm345_vm0 = vmor %vm343_vm14, %vm344_vm15  ;;  %vm1236_vm15 = vcmask 523264  }
 0x309   :  { %v234_v44 = vpop.xlane.xlu2 %233  ;;  %v339_v46 = vmul.f32 %v2370_v42, %v338_v43 }
 0x30a   :  { %v243_v45 = vmul.f32 %v2824_v34, %v234_v44 }
 0x30b   :  { %v340_v48 = vmul.f32 0.5, %v339_v46 }
 0x30c   :  { %v245_v47 = vadd.f32 1e-06, %v243_v45 }
 0x30d   :  { %v341_v49 = vsub.f32 1.5, %v340_v48  ;;  %v433_v48 = vld [vmem:[%s3346_s12] sm:$0xff] }
 0x30e   :  { %2371 = vrsqrt.f32 %v245_v47  ;;  %vm262_vm3 = vweird.f32 %v245_v47  ;;  %611 = vmatpush.msra.mxu1 %v433_v48 }
 0x30f   :  { %v342_v52 = vmul.f32 %v2370_v42, %v341_v49 }
 0x311   :  { %v346_v57 = vsel %vm345_vm0, %v2370_v42, %v342_v52 }
 0x312   :  { %v348_v60 = vmul.f32 %v346_v57, %v312_v25 }
 0x314   :  { %v2372_v50 = vpop.eup %2371  ;;  %v353_v1 = vmul.f32 %v2836_v56, %v348_v60 }
 0x315   :  { %v257_v51 = vmul.f32 %v2372_v50, %v245_v47  ;;  %vm263_vm1 = vweird.f32 %v2372_v50 }
 0x316   :  { %vm264_vm4 = vmor %vm262_vm3, %vm263_vm1 }
 0x317   :  { %v258_v53 = vmul.f32 %v2372_v50, %v257_v51 }
 0x319   :  { %v259_v54 = vmul.f32 0.5, %v258_v53 }
 0x31b   :  { %v260_v58 = vsub.f32 1.5, %v259_v54 }
 0x31d   :  { %v261_v59 = vmul.f32 %v2372_v50, %v260_v58 }
 0x31f   :  { %v265_v61 = vsel %vm264_vm4, %v2372_v50, %v261_v59 }
 0x320   :  { %v267_v62 = vmul.f32 %v265_v61, %v223_v32 }
 0x322   :  { %v272_v0 = vmul.f32 %v2831_v55, %v267_v62  ;;  %v2913_v55 = vld [vmem:[%s3337_s3] sm:$0xff] }
 0x324   :  { %v355_v3 = vadd.f32 %v353_v1, %v272_v0  ;;  %v434_v0 = vld [vmem:[%s3346_s12 + $0x8] sm:$0xff]  ;;  %v435_v1 = vld [vmem:[%s3346_s12 + $0x10] sm:$0xff] }
 0x325   :  { %588 = vmatpush.msra.mxu0 %v434_v0 }
 0x326   :  { %v2903_v4 = vadd.f32 %v357_v2, %v355_v3 }
 0x327   :  { %701 = vmatpush.msrb.mxu0 %v435_v1 }
 0x328   :  { %v362_v5 = vmul.f32 %v2903_v4, %v2903_v4 }
 0x32a   :  { %v366_v6 = vsel %vm228_vm2, %v362_v5, 0.0 }
 0x32b   :  { %367 = vadd.xlane.f32.xlu1 %v366_v6 }
 0x344   :  { %477 = vrot.lane.b32.xlu1 %v2873_v22, %s2489_s4 }
 0x357   :  { %v463_v56 = vpop.f32.mrf.mxu2 }
 0x358   :  { %v464_v7 = vadd.f32 %v463_v56, %v2913_v55 }
 0x35a   :  { %v466_v8 = vsel %vm441_vm13, %v464_v7, -inf }
 0x35b   :  { %467 = vmax.xlane.f32.xlu0 %v466_v8 }
 0x35f   :  { %v530_v10 = vpop.f32.mrf.mxu2 }
 0x360   :  { %v531_v11 = vadd.f32 %v2920_v9, %v530_v10  ;;  %v2975_v10 = vld [vmem:[%s3337_s3 + $0x18] sm:$0xff] }
 0x362   :  { %v533_v12 = vsel %vm441_vm13, %v531_v11, -inf }
 0x363   :  { %534 = vmax.xlane.f32.xlu2 %v533_v12 }
 0x367   :  { %v643_v14 = vpop.f32.mrf.mxu2 }
 0x368   :  { %v644_v15 = vadd.f32 %v2927_v13, %v643_v14 }
 0x36a   :  { %v646_v17 = vsel %vm441_vm13, %v644_v15, -inf }
 0x36b   :  { %647 = vmax.xlane.f32.xlu2 %v646_v17 }
 0x39e   :  { %v368_v18 = vpop.xlane.xlu1 %367 }
 0x39f   :  { %v370_v20 = vmul.f32 %v368_v18, %v2824_v34 }
 0x3a1   :  { %v372_v21 = vadd.f32 1e-06, %v370_v20 }
 0x3a3   :  { %2373 = vrsqrt.f32 %v372_v21  ;;  %vm389_vm6 = vweird.f32 %v372_v21 }
 0x3a9   :  { %v2374_v24 = vpop.eup %2373 }
 0x3aa   :  { %v384_v25 = vmul.f32 %v2374_v24, %v372_v21  ;;  %vm390_vm5 = vweird.f32 %v2374_v24 }
 0x3ab   :  { %vm391_vm7 = vmor %vm389_vm6, %vm390_vm5 }
 0x3ac   :  { %v385_v26 = vmul.f32 %v2374_v24, %v384_v25 }
 0x3ae   :  { %v386_v27 = vmul.f32 0.5, %v385_v26 }
 0x3b0   :  { %v387_v28 = vsub.f32 1.5, %v386_v27 }
 0x3b2   :  { %v388_v29 = vmul.f32 %v2374_v24, %v387_v28 }
 0x3b4   :  { %v392_v30 = vsel %vm391_vm7, %v2374_v24, %v388_v29 }
 0x3b5   :  { %v394_v31 = vmul.f32 %v392_v30, %v2903_v4 }
 0x3b6   :  { %v478_v32 = vpop.permute.xlu1 %477 }
 0x3b7   :  { %498 = vmatpush.msrb.mxu3 %v478_v32  ;;  %v399_v33 = vmul.f32 %v2868_v16, %v394_v31 }
 0x3b9   :  { %2237 = vmatmul.msk.f32.gmra.mxu1 %vm228_vm2, %v399_v33 }
 0x3ce   :  { %v468_v35 = vpop.xlane.xlu0 %467 }
 0x3cf   :  { %v469_v36 = vsub.f32 %v464_v7, %v468_v35 }
 0x3d1   :  { %v470_v37 = vmul.f32 1.442695, %v469_v36 }
 0x3d3   :  { %2375 = vpow2.f32 %v470_v37 }
 0x3d6   :  { %v535_v23 = vpop.xlane.xlu2 %534 }
 0x3d7   :  { %v536_v19 = vsub.f32 %v531_v11, %v535_v23 }
 0x3d9   :  { %v2376_v38 = vpop.eup %2375  ;;  %v537_v39 = vmul.f32 1.442695, %v536_v19 }
 0x3da   :  { %v472_v40 = vsel %vm441_vm13, %v2376_v38, 0.0 }
 0x3db   :  { %2377 = vpow2.f32 %v537_v39  ;;  %473 = vadd.xlane.f32.xlu0 %v472_v40 }
 0x3de   :  { %v648_v41 = vpop.xlane.xlu2 %647 }
 0x3df   :  { %v649_v42 = vsub.f32 %v644_v15, %v648_v41 }
 0x3e1   :  { %v2378_v43 = vpop.eup %2377  ;;  %v650_v44 = vmul.f32 1.442695, %v649_v42 }
 0x3e2   :  { %v539_v16 = vsel %vm441_vm13, %v2378_v43, 0.0 }
 0x3e3   :  { %2379 = vpow2.f32 %v650_v44  ;;  %540 = vadd.xlane.f32.xlu2 %v539_v16 }
 0x3e9   :  { %v2380_v45 = vpop.eup %2379 }
 0x3ea   :  { %v652_v46 = vsel %vm441_vm13, %v2380_v45, 0.0 }
 0x3eb   :  { %653 = vadd.xlane.f32.xlu0 %v652_v46 }
 0x3fb   :  { %544 = vrot.lane.b32.xlu2 %v2873_v22, %s2490_s18 }
 0x3ff   :  { %657 = vrot.lane.b32.xlu0 %v2873_v22, %s2491_s19 }
 0x403   :  { %711 = vrot.lane.b32.xlu2 %v2873_v22, %s2492_s1 }
 0x407   :  { %709 = vrot.lane.b32.xlu0 %v2873_v22, %s2493_s7 }
 0x436   :  { %v2946_v47 = vpop.f32.mrf.mxu1 }
 0x437   :  { %836 = vrot.lane.b32.xlu0 %v2946_v47, %s2489_s4  ;;  %799 = vrot.lane.b32.xlu1 %v2946_v47, %s2486_s25 }
 0x44e   :  { %v474_v49 = vpop.xlane.xlu0 %473 }
 0x44f   :  { %2381 = vrcp.f32 %v474_v49 }
 0x455   :  { %v2382_v50 = vpop.eup %2381 }
 0x456   :  { %v541_v51 = vpop.xlane.xlu2 %540  ;;  %v476_v52 = vmul.f32 %v2382_v50, %v2376_v38 }
 0x457   :  { %2383 = vrcp.f32 %v541_v51 }
 0x458   :  { %2240 = vmatmul.msk.f32.vlgmr.msrb.gmra.mxu3 %vm441_vm13, %v476_v52 }
 0x45d   :  { %v2384_v53 = vpop.eup %2383 }
 0x45e   :  { %v543_v54 = vmul.f32 %v2384_v53, %v2378_v43  ;;  %v545_v57 = vpop.permute.xlu2 %544  ;;  %v654_v58 = vpop.xlane.xlu0 %653 }
 0x45f   :  { %565 = vmatpush.msra.mxu3 %v545_v57  ;;  %2385 = vrcp.f32 %v654_v58 }
 0x460   :  { %2244 = vmatmul.msk.f32.vlgmr.msra.gmra.mxu3 %vm441_vm13, %v543_v54 }
 0x465   :  { %v2386_v60 = vpop.eup %2385 }
 0x466   :  { %v712_v59 = vpop.permute.xlu2 %711  ;;  %v656_v61 = vmul.f32 %v2386_v60, %v2380_v45  ;;  %v436_v45 = vld [vmem:[%s3346_s12 + $0x18] sm:$0xff] }
 0x467   :  { %2253 = vmatpush.xpose.msk.msrb.mxu1 %vm441_vm13, %v712_v59 }
 0x471   :  { %v658_v62 = vpop.permute.xlu0 %657 }
 0x472   :  { %678 = vmatpush.msrb.mxu3 %v658_v62 }
 0x473   :  { %2250 = vmatmul.msk.f32.vlgmr.msrb.gmra.mxu3 %vm441_vm13, %v656_v61 }
 0x474   :  { %792 = vmatpush.msra.mxu3 %v436_v45 }
 0x479   :  { %v710_v2 = vpop.permute.xlu0 %709 }
 0x4a9   :  { %v837_v5 = vpop.permute.xlu0 %836  ;;  %v800_v56 = vpop.permute.xlu1 %799 }
 0x4db   :  { %v500_v3 = vpop.f32.mrf.mxu3 }
 0x4dc   :  { %2246 = vmatmul.msk.f32.vlgmr.msra.gmra.mxu1 %vm441_vm13, %v500_v3 }
 0x4dd   :  { %857 = vmatpush.msra.mxu1 %v837_v5 }
 0x4e3   :  { %v567_v6 = vpop.f32.mrf.mxu3 }
 0x4e4   :  { %2245 = vmatmul.msk.f32.vlgmr.msra.gmra.mxu0 %vm441_vm13, %v567_v6  ;;  %2254 = vmatmul.msk.f32.vlgmr.msrb.gmra.mxu1 %vm441_vm13, %v710_v2 }
 0x4e5   :  { %2257 = vmatpush.xpose.msk.msra.mxu0 %vm441_vm13, %v800_v56  ;;  %968 = vmatpush.msrb.mxu1 %v433_v48 }
 0x4f6   :  { %v680_v7 = vpop.f32.mrf.mxu3 }
 0x4f7   :  { %2251 = vmatmul.msk.f32.vlgmr.msrb.gmra.mxu0 %vm441_vm13, %v680_v7 }
 0x4f8   :  { %945 = vmatpush.msrb.mxu0 %v434_v0 }
 0x4ff   :  { %2258 = vmatmul.msk.f32.vlgmr.msra.gmra.mxu0 %vm441_vm13, %v2946_v47 }
 0x500   :  { %1056 = vmatpush.msra.mxu0 %v435_v1 }
 0x559   :  { %v613_v8 = vpop.f32.mrf.mxu1 }
 0x561   :  { %v590_v11 = vpop.f32.mrf.mxu0  ;;  %v734_v12 = vpop.f32.mrf.mxu1 }
 0x562   :  { %v614_v14 = vadd.f32 %v613_v8, %v590_v11  ;;  %v735_v15 = vadd.f32 %v2975_v10, %v734_v12 }
 0x564   :  { %v737_v17 = vsel %vm441_vm13, %v735_v15, -inf }
 0x565   :  { %738 = vmax.xlane.f32.xlu0 %v737_v17 }
 0x574   :  { %v703_v18 = vpop.f32.mrf.mxu0 }
 0x575   :  { %v2979_v20 = vadd.f32 %v703_v18, %v614_v14 }
 0x579   :  { %862 = vrot.lane.b32.xlu0 %v2946_v47, %s2487_s5 }
 0x57c   :  { %v822_v21 = vpop.f32.mrf.mxu0 }
 0x57d   :  { %v823_v24 = vadd.f32 %v822_v21, %v2913_v55 }
 0x57f   :  { %v825_v25 = vsel %vm441_vm13, %v823_v24, -inf }
 0x580   :  { %826 = vmax.xlane.f32.xlu1 %v825_v25 }
 0x581   :  { %973 = vrot.lane.b32.xlu0 %v2946_v47, %s2488_s8 }
 0x5d8   :  { %v739_v26 = vpop.xlane.xlu0 %738 }
 0x5d9   :  { %v740_v27 = vsub.f32 %v735_v15, %v739_v26 }
 0x5db   :  { %v741_v28 = vmul.f32 1.442695, %v740_v27 }
 0x5dd   :  { %2387 = vpow2.f32 %v741_v28 }
 0x5e3   :  { %v2388_v29 = vpop.eup %2387 }
 0x5e4   :  { %v743_v30 = vsel %vm441_vm13, %v2388_v29, 0.0 }
 0x5e5   :  { %744 = vadd.xlane.f32.xlu1 %v743_v30 }
 0x5f3   :  { %v827_v31 = vpop.xlane.xlu1 %826 }
 0x5f4   :  { %v828_v32 = vsub.f32 %v823_v24, %v827_v31 }
 0x5f6   :  { %v829_v33 = vmul.f32 1.442695, %v828_v32 }
 0x5f8   :  { %2389 = vpow2.f32 %v829_v33 }
 0x5fe   :  { %v2390_v35 = vpop.eup %2389  ;;  %864 = vrot.lane.b32.xlu1 %v2946_v47, %s2485_s0 }
 0x5ff   :  { %v831_v36 = vsel %vm441_vm13, %v2390_v35, 0.0 }
 0x600   :  { %832 = vadd.xlane.f32.xlu2 %v831_v36 }
 0x606   :  { %1064 = vrot.lane.b32.xlu1 %v2946_v47, %s2492_s1 }
 0x618   :  { %748 = vrot.lane.b32.xlu2 %v2873_v22, %s2494_s2  ;;  %v863_v22 = vpop.permute.xlu0 %862 }
 0x620   :  { %975 = vrot.lane.b32.xlu2 %v2946_v47, %s2484_s22  ;;  %v974_v16 = vpop.permute.xlu0 %973 }
 0x628   :  { %1062 = vrot.lane.b32.xlu2 %v2946_v47, %s2493_s7 }
 0x658   :  { %v745_v37 = vpop.xlane.xlu1 %744 }
 0x659   :  { %2391 = vrcp.f32 %v745_v37 }
 0x65f   :  { %v2392_v38 = vpop.eup %2391 }
 0x660   :  { %v747_v40 = vmul.f32 %v2392_v38, %v2388_v29  ;;  %v1195_v38 = vld [vmem:[%s3348_s14 + $0x10] sm:$0xff] }
 0x670   :  { %v865_v23 = vpop.permute.xlu1 %864 }
 0x673   :  { %v833_v19 = vpop.xlane.xlu2 %832 }
 0x674   :  { %2393 = vrcp.f32 %v833_v19 }
 0x678   :  { %v1065_v43 = vpop.permute.xlu1 %1064 }
 0x67a   :  { %v2394_v39 = vpop.eup %2393 }
 0x67b   :  { %v835_v41 = vmul.f32 %v2394_v39, %v2390_v35  ;;  %v749_v42 = vpop.permute.xlu2 %748  ;;  %v1194_v39 = vld [vmem:[%s3348_s14 + $0x8] sm:$0xff] }
 0x67c   :  { %769 = vmatpush.msra.mxu2 %v749_v42 }
 0x67d   :  { %2255 = vmatmul.msk.f32.vlgmr.msra.gmra.mxu2 %vm441_vm13, %v747_v40  ;;  %2259 = vmatmul.msk.f32.vlgmr.msra.gmra.mxu1 %vm441_vm13, %v835_v41  ;;  %v1193_v40 = vld [vmem:[%s3348_s14] sm:$0xff] }
 0x67e   :  { %2260 = vmatpush.xpose.msk.msrb.mxu2 %vm441_vm13, %v865_v23  ;;  %2269 = vmatpush.xpose.msk.msra.mxu1 %vm441_vm13, %v1065_v43 }
 0x683   :  { %v976_v44 = vpop.permute.xlu2 %975 }
 0x684   :  { %2265 = vmatpush.xpose.msk.msra.mxu2 %vm441_vm13, %v976_v44 }
 0x685   :  { %2261 = vmatmul.msk.f32.vlgmr.msrb.gmra.mxu2 %vm441_vm13, %v863_v22 }
 0x68b   :  { %v1063_v49 = vpop.permute.xlu2 %1062 }
 0x68d   :  { %2266 = vmatmul.msk.f32.vlgmr.msra.gmra.mxu2 %vm441_vm13, %v974_v16 }
 0x6fa   :  { %v859_v46 = vpop.f32.mrf.mxu1 }
 0x6fb   :  { %2264 = vmatmul.msk.f32.vlgmr.msrb.gmra.mxu1 %vm441_vm13, %v859_v46 }
 0x700   :  { %v771_v48 = vpop.f32.mrf.mxu2 }
 0x701   :  { %2256 = vmatmul.msk.f32.vlgmr.msra.gmra.mxu3 %vm441_vm13, %v771_v48 }
 0x703   :  { %2270 = vmatmul.msk.f32.vlgmr.msra.gmra.mxu1 %vm441_vm13, %v1063_v49  ;;  %v2357_v49 = vld [vmem:[%s3347_s13] ss:$0 sm:$0xff] }
 0x708   :  { %v887_v50 = vpop.f32.mrf.mxu2 }
 0x709   :  { %v888_v51 = vadd.f32 %v2920_v9, %v887_v50 }
 0x70b   :  { %v890_v52 = vsel %vm441_vm13, %v888_v51, -inf }
 0x70c   :  { %891 = vmax.xlane.f32.xlu1 %v890_v52 }
 0x710   :  { %v998_v53 = vpop.f32.mrf.mxu2 }
 0x711   :  { %v999_v54 = vadd.f32 %v2927_v13, %v998_v53 }
 0x713   :  { %v1001_v57 = vsel %vm441_vm13, %v999_v54, -inf }
 0x714   :  { %1002 = vmax.xlane.f32.xlu2 %v1001_v57 }
 0x778   :  { %v3016_v58 = vpop.f32.mrf.mxu1 }
 0x77f   :  { %v892_v59 = vpop.xlane.xlu1 %891 }
 0x780   :  { %v893_v60 = vsub.f32 %v888_v51, %v892_v59  ;;  %v1087_v61 = vpop.f32.mrf.mxu1 }
 0x781   :  { %v1088_v62 = vadd.f32 %v2975_v10, %v1087_v61 }
 0x782   :  { %v894_v0 = vmul.f32 1.442695, %v893_v60 }
 0x783   :  { %v1090_v1 = vsel %vm441_vm13, %v1088_v62, -inf }
 0x784   :  { %2395 = vpow2.f32 %v894_v0  ;;  %1091 = vmax.xlane.f32.xlu0 %v1090_v1  ;;  %v794_v30 = vpop.f32.mrf.mxu3 }
 0x785   :  { %v797_v31 = vadd.f32 %v794_v30, %v2979_v20 }
 0x787   :  { %v1003_v2 = vpop.xlane.xlu2 %1002  ;;  %v3033_v32 = vadd.f32 %v797_v31, %v2843_v63  ;;  %v1196_v63 = vld [vmem:[%s3348_s14 + $0x18] sm:$0xff] }
 0x788   :  { %v1004_v3 = vsub.f32 %v999_v54, %v1003_v2  ;;  %1215 = vmatpush.msrb.mxu1 %v1196_v63 }
 0x789   :  { %v1154_v33 = vmul.f32 %v3033_v32, %v3033_v32 }
 0x78a   :  { %v2396_v5 = vpop.eup %2395  ;;  %v1005_v6 = vmul.f32 1.442695, %v1004_v3  ;;  %1216 = vmatpush.msrb.mxu1 %v1195_v38  ;;  %v1235_v3 = vld [vmem:[%s3349_s15 + $0x38] sm:$0xff] }
 0x78b   :  { %v896_v56 = vsel %vm441_vm13, %v2396_v5, 0.0 }
 0x78c   :  { %2397 = vpow2.f32 %v1005_v6  ;;  %897 = vadd.xlane.f32.xlu1 %v896_v56  ;;  %1217 = vmatpush.msrb.mxu1 %v1194_v39  ;;  %v1231_v6 = vld [vmem:[%s3349_s15 + $0x18] sm:$0xff]  ;;  %v1230_v56 = vld [vmem:[%s3349_s15 + $0x10] sm:$0xff] }
 0x78e   :  { %1218 = vmatpush.msrb.mxu1 %v1193_v40 }
 0x790   :  { %1251 = vmatpush.msra.mxu1 %v1235_v3 }
 0x792   :  { %v2398_v7 = vpop.eup %2397 }
 0x793   :  { %v1007_v8 = vsel %vm441_vm13, %v2398_v7, 0.0 }
 0x794   :  { %1008 = vadd.xlane.f32.xlu2 %v1007_v8 }
 0x7a5   :  { %901 = vrot.lane.b32.xlu1 %v2946_v47, %s2490_s18 }
 0x7ac   :  { %1012 = vrot.lane.b32.xlu2 %v2946_v47, %s2491_s19 }
 0x7f7   :  { %v1092_v11 = vpop.xlane.xlu0 %1091 }
 0x7f8   :  { %v1093_v12 = vsub.f32 %v1088_v62, %v1092_v11  ;;  %v1228_v11 = vld [vmem:[%s3349_s15] sm:$0xff] }
 0x7fa   :  { %v1094_v14 = vmul.f32 1.442695, %v1093_v12 }
 0x7fc   :  { %2399 = vpow2.f32 %v1094_v14 }
 0x7ff   :  { %v898_v18 = vpop.xlane.xlu1 %897 }
 0x800   :  { %2401 = vrcp.f32 %v898_v18 }
 0x802   :  { %v2400_v15 = vpop.eup %2399 }
 0x803   :  { %v1096_v17 = vsel %vm441_vm13, %v2400_v15, 0.0 }
 0x804   :  { %1097 = vadd.xlane.f32.xlu0 %v1096_v17 }
 0x806   :  { %v2402_v24 = vpop.eup %2401 }
 0x807   :  { %v1009_v21 = vpop.xlane.xlu2 %1008  ;;  %v900_v25 = vmul.f32 %v2402_v24, %v2396_v5  ;;  %v1232_v5 = vld [vmem:[%s3349_s15 + $0x20] sm:$0xff] }
 0x808   :  { %2403 = vrcp.f32 %v1009_v21 }
 0x80e   :  { %v2404_v28 = vpop.eup %2403 }
 0x80f   :  { %v1013_v27 = vpop.permute.xlu2 %1012  ;;  %v1011_v29 = vmul.f32 %v2404_v28, %v2398_v7  ;;  %v1229_v7 = vld [vmem:[%s3349_s15 + $0x8] sm:$0xff] }
 0x817   :  { %v902_v26 = vpop.permute.xlu1 %901 }
 0x818   :  { %1101 = vrot.lane.b32.xlu0 %v2946_v47, %s2494_s2  ;;  %922 = vmatpush.msrb.mxu3 %v902_v26  ;;  %v1156_v47 = vsel %vm228_vm2, %v1154_v33, 0.0 }
 0x819   :  { %2262 = vmatmul.msk.f32.vlgmr.msrb.gmra.mxu3 %vm441_vm13, %v900_v25 }
 0x81a   :  { %1033 = vmatpush.msra.mxu3 %v1013_v27 }
 0x81c   :  { %1145 = vmatpush.msrb.mxu3 %v436_v45 }
 0x821   :  { %2267 = vmatmul.msk.f32.vlgmr.msra.gmra.mxu3 %vm441_vm13, %v1011_v29 }
 0x842   :  { %1157 = vadd.xlane.f32.xlu0 %v1156_v47 }
 0x877   :  { %v1098_v35 = vpop.xlane.xlu0 %1097 }
 0x878   :  { %2405 = vrcp.f32 %v1098_v35 }
 0x87e   :  { %v2406_v36 = vpop.eup %2405 }
 0x87f   :  { %v1100_v37 = vmul.f32 %v2406_v36, %v2400_v15 }
 0x88a   :  { %v1102_v23 = vpop.permute.xlu0 %1101 }
 0x88b   :  { %1122 = vmatpush.msrb.mxu2 %v1102_v23  ;;  %v2281_v23 = vld [vmem:[%s3345_s11 + $0x38] sm:$0xff] }
 0x88c   :  { %2271 = vmatmul.msk.f32.vlgmr.msrb.gmra.mxu2 %vm441_vm13, %v1100_v37 }
 0x88d   :  { %1332 = vmatpush.msra.mxu2 %v2281_v23 }
 0x89c   :  { %v924_v19 = vpop.f32.mrf.mxu3 }
 0x89d   :  { %2263 = vmatmul.msk.f32.vlgmr.msrb.gmra.mxu0 %vm441_vm13, %v924_v19  ;;  %v2280_v19 = vld [vmem:[%s3345_s11 + $0x30] sm:$0xff] }
 0x89e   :  { %1333 = vmatpush.msra.mxu2 %v2280_v19 }
 0x8a4   :  { %v1035_v20 = vpop.f32.mrf.mxu3 }
 0x8a5   :  { %2268 = vmatmul.msk.f32.vlgmr.msra.gmra.mxu0 %vm441_vm13, %v1035_v20  ;;  %v2278_v20 = vld [vmem:[%s3345_s11 + $0x20] sm:$0xff] }
 0x8b5   :  { %v1158_v41 = vpop.xlane.xlu0 %1157 }
 0x8b6   :  { %v1162_v42 = vmul.f32 %v1158_v41, %v2824_v34 }
 0x8b8   :  { %v1164_v43 = vadd.f32 1e-06, %v1162_v42 }
 0x8ba   :  { %2407 = vrsqrt.f32 %v1164_v43  ;;  %vm1172_vm9 = vweird.f32 %v1164_v43 }
 0x8c0   :  { %v2408_v22 = vpop.eup %2407 }
 0x8c1   :  { %v1167_v44 = vmul.f32 %v2408_v22, %v1164_v43  ;;  %vm1173_vm8 = vweird.f32 %v2408_v22 }
 0x8c2   :  { %vm1174_vm10 = vmor %vm1172_vm9, %vm1173_vm8 }
 0x8c3   :  { %v1168_v16 = vmul.f32 %v2408_v22, %v1167_v44 }
 0x8c5   :  { %v1169_v45 = vmul.f32 0.5, %v1168_v16  ;;  %v2358_v16 = vld [vmem:[%s3344_s10 + $0x1] ss:$0 sm:$0xff] }
 0x8c7   :  { %v1170_v46 = vsub.f32 1.5, %v1169_v45 }
 0x8c9   :  { %v1171_v48 = vmul.f32 %v2408_v22, %v1170_v46 }
 0x8cb   :  { %v1175_v50 = vsel %vm1174_vm10, %v2408_v22, %v1171_v48 }
 0x8cc   :  { %v1186_v51 = vmul.f32 %v1175_v50, %v3033_v32 }
 0x8ce   :  { %v1191_v52 = vmul.f32 %v2357_v49, %v1186_v51 }
 0x8d0   :  { %2273 = vmatmul.msk.f32.vlgmr.msrb.gmra.mxu1 %vm228_vm2, %v1191_v52 }
 0x90f   :  { %v1124_v53 = vpop.f32.mrf.mxu2 }
 0x910   :  { %2272 = vmatmul.msk.f32.vlgmr.msrb.gmra.mxu3 %vm441_vm13, %v1124_v53 }
 0x91a   :  { %v947_v54 = vpop.f32.mrf.mxu0 }
 0x91b   :  { %v971_v59 = vadd.f32 %v3016_v58, %v947_v54  ;;  %v1234_v58 = vld [vmem:[%s3349_s15 + $0x30] sm:$0xff] }
 0x91c   :  { %1252 = vmatpush.msra.mxu1 %v1234_v58 }
 0x922   :  { %v1058_v57 = vpop.f32.mrf.mxu0 }
 0x923   :  { %v1061_v60 = vadd.f32 %v1058_v57, %v971_v59 }
 0x94d   :  { %v1220_v29 = vpop.f32.mrf.mxu1 }
 0x94e   :  { %v1226_v30 = vmax.f32 %v1220_v29, 0.0 }
 0x993   :  { %v1147_v61 = vpop.f32.mrf.mxu3 }
 0x994   :  { %v1150_v62 = vadd.f32 %v1147_v61, %v1061_v60 }
 0x996   :  { %v3062_v0 = vadd.f32 %v1150_v62, %v2903_v4  ;;  %v1233_v4 = vld [vmem:[%s3349_s15 + $0x28] sm:$0xff] }
 0x997   :  { %1253 = vmatpush.msra.mxu1 %v1233_v4 }
 0x998   :  { %v1155_v1 = vmul.f32 %v3062_v0, %v3062_v0 }
 0x999   :  { %1254 = vmatpush.msra.mxu1 %v1232_v5 }
 0x99a   :  { %v1159_v2 = vsel %vm228_vm2, %v1155_v1, 0.0 }
 0x99b   :  { %1160 = vadd.xlane.f32.xlu1 %v1159_v2  ;;  %1255 = vmatpush.msra.mxu1 %v1231_v6 }
 0x99d   :  { %1256 = vmatpush.msra.mxu1 %v1230_v56 }
 0x99f   :  { %1257 = vmatpush.msra.mxu1 %v1229_v7 }
 0x9a1   :  { %1258 = vmatpush.msra.mxu1 %v1228_v11 }
 0xa0e   :  { %v1161_v8 = vpop.xlane.xlu1 %1160 }
 0xa0f   :  { %v1163_v12 = vmul.f32 %v1161_v8, %v2824_v34 }
 0xa11   :  { %v1165_v14 = vadd.f32 1e-06, %v1163_v12 }
 0xa13   :  { %2409 = vrsqrt.f32 %v1165_v14  ;;  %vm1182_vm12 = vweird.f32 %v1165_v14 }
 0xa19   :  { %v2410_v15 = vpop.eup %2409 }
 0xa1a   :  { %v1177_v17 = vmul.f32 %v2410_v15, %v1165_v14  ;;  %vm1183_vm11 = vweird.f32 %v2410_v15 }
 0xa1b   :  { %vm1184_vm14 = vmor %vm1182_vm12, %vm1183_vm11 }
 0xa1c   :  { %v1178_v18 = vmul.f32 %v2410_v15, %v1177_v17 }
 0xa1e   :  { %v1179_v21 = vmul.f32 0.5, %v1178_v18 }
 0xa20   :  { %v1180_v24 = vsub.f32 1.5, %v1179_v21 }
 0xa22   :  { %v1181_v25 = vmul.f32 %v2410_v15, %v1180_v24 }
 0xa24   :  { %v1185_v26 = vsel %vm1184_vm14, %v2410_v15, %v1181_v25 }
 0xa25   :  { %v1187_v27 = vmul.f32 %v1185_v26, %v3062_v0 }
 0xa27   :  { %v1192_v28 = vmul.f32 %v2357_v49, %v1187_v27 }
 0xa29   :  { %2274 = vmatmul.msk.f32.gmra.mxu1 %vm228_vm2, %v1192_v28 }
 0xa31   :  { %2275 = vmatmul.msk.f32.vlgmr.msra.gmra.mxu1 %vm1236_vm15, %v1226_v30 }
 0xaa6   :  { %v1223_v31 = vpop.f32.mrf.mxu1 }
 0xaa7   :  { %v1227_v33 = vmax.f32 %v1223_v31, 0.0 }
 0xaa9   :  { %2276 = vmatmul.msk.f32.gmra.mxu1 %vm1236_vm15, %v1227_v33 }
 0xaae   :  { %v1260_v47 = vpop.f32.mrf.mxu1 }
 0xaaf   :  { %v3097_v35 = vadd.f32 %v1260_v47, %v3033_v32  ;;  %v2279_v32 = vld [vmem:[%s3345_s11 + $0x28] sm:$0xff] }
 0xab0   :  { %1334 = vmatpush.msra.mxu2 %v2279_v32 }
 0xab1   :  { %v1270_v36 = vmul.f32 %v3097_v35, %v3097_v35 }
 0xab2   :  { %1335 = vmatpush.msra.mxu2 %v2278_v20 }
 0xab3   :  { %v1272_v37 = vsel %vm228_vm2, %v1270_v36, 0.0 }
 0xab4   :  { %1273 = vadd.xlane.f32.xlu2 %v1272_v37  ;;  %v2284_v37 = vld [vmem:[%s3346_s12 + $0x20] sm:$0xff] }
 0xb26   :  { %v1263_v50 = vpop.f32.mrf.mxu1 }
 0xb27   :  { %v1274_v63 = vpop.xlane.xlu2 %1273  ;;  %v3133_v51 = vadd.f32 %v1263_v50, %v3062_v0 }
 0xb28   :  { %v1278_v38 = vmul.f32 %v1274_v63, %v2824_v34 }
 0xb29   :  { %v1271_v52 = vmul.f32 %v3133_v51, %v3133_v51 }
 0xb2a   :  { %v1280_v39 = vadd.f32 1e-06, %v1278_v38 }
 0xb2b   :  { %v1275_v53 = vsel %vm228_vm2, %v1271_v52, 0.0  ;;  %v2285_v52 = vld [vmem:[%s3346_s12 + $0x28] sm:$0xff] }
 0xb2c   :  { %2411 = vrsqrt.f32 %v1280_v39  ;;  %vm1288_vm1 = vweird.f32 %v1280_v39 }
 0xb32   :  { %v2412_v40 = vpop.eup %2411 }
 0xb33   :  { %v1283_v41 = vmul.f32 %v2412_v40, %v1280_v39  ;;  %vm1289_vm0 = vweird.f32 %v2412_v40 }
 0xb34   :  { %vm1290_vm3 = vmor %vm1288_vm1, %vm1289_vm0 }
 0xb35   :  { %v1284_v42 = vmul.f32 %v2412_v40, %v1283_v41 }
 0xb37   :  { %v1285_v43 = vmul.f32 0.5, %v1284_v42 }
 0xb39   :  { %v1286_v22 = vsub.f32 1.5, %v1285_v43 }
 0xb3b   :  { %v1287_v44 = vmul.f32 %v2412_v40, %v1286_v22 }
 0xb3d   :  { %v1291_v45 = vsel %vm1290_vm3, %v2412_v40, %v1287_v44 }
 0xb3e   :  { %v1302_v46 = vmul.f32 %v1291_v45, %v3097_v35 }
 0xb40   :  { %v1307_v48 = vmul.f32 %v2358_v16, %v1302_v46 }
 0xb42   :  { %2282 = vmatmul.msk.f32.vlgmr.msra.gmra.mxu2 %vm228_vm2, %v1307_v48 }
 0xbc5   :  { %v3120_v49 = vpop.f32.mrf.mxu2 }
 0xbc6   :  { %1525 = vrot.lane.b32.xlu2 %v3120_v49, %s2484_s22  ;;  %1412 = vrot.lane.b32.xlu1 %v3120_v49, %s2487_s5 }
 0xbc7   :  { %1414 = vrot.lane.b32.xlu0 %v3120_v49, %s2485_s0 }
 0xbcf   :  { %1523 = vrot.lane.b32.xlu0 %v3120_v49, %s2488_s8 }
 0xbd7   :  { %1349 = vrot.lane.b32.xlu0 %v3120_v49, %s2486_s25 }
 0xc01   :  { %1276 = vadd.xlane.f32.xlu0 %v1275_v53  ;;  %v2286_v53 = vld [vmem:[%s3346_s12 + $0x30] sm:$0xff] }
 0xc15   :  { %1562 = vrot.lane.b32.xlu0 %v3120_v49, %s2491_s19 }
 0xc20   :  { %v1526_v54 = vpop.permute.xlu2 %1525 }
 0xc21   :  { %2296 = vmatpush.xpose.msk.msrb.mxu1 %vm441_vm13, %v1526_v54 }
 0xc38   :  { %v1413_v59 = vpop.permute.xlu1 %1412 }
 0xc39   :  { %v1415_v57 = vpop.permute.xlu0 %1414 }
 0xc3a   :  { %2291 = vmatpush.xpose.msk.msrb.mxu0 %vm441_vm13, %v1415_v57 }
 0xc3d   :  { %2292 = vmatmul.msk.f32.vlgmr.msrb.gmra.mxu0 %vm441_vm13, %v1413_v59 }
 0xc3e   :  { %1518 = vmatpush.msra.mxu0 %v2284_v37 }
 0xc41   :  { %v1524_v60 = vpop.permute.xlu0 %1523 }
 0xc42   :  { %2297 = vmatmul.msk.f32.vlgmr.msrb.gmra.mxu1 %vm441_vm13, %v1524_v60 }
 0xc49   :  { %v1350_v61 = vpop.permute.xlu0 %1349 }
 0xc4a   :  { %2288 = vmatpush.xpose.msk.msra.mxu3 %vm441_vm13, %v1350_v61 }
 0xc4d   :  { %2289 = vmatmul.msk.f32.vlgmr.msra.gmra.mxu3 %vm441_vm13, %v3120_v49 }
 0xc74   :  { %v1277_v62 = vpop.xlane.xlu0 %1276 }
 0xc75   :  { %v1279_v0 = vmul.f32 %v1277_v62, %v2824_v34 }
 0xc77   :  { %v1281_v1 = vadd.f32 1e-06, %v1279_v0 }
 0xc79   :  { %2413 = vrsqrt.f32 %v1281_v1  ;;  %vm1298_vm5 = vweird.f32 %v1281_v1 }
 0xc7f   :  { %v2414_v2 = vpop.eup %2413 }
 0xc80   :  { %v1293_v3 = vmul.f32 %v2414_v2, %v1281_v1  ;;  %vm1299_vm4 = vweird.f32 %v2414_v2 }
 0xc81   :  { %vm1300_vm6 = vmor %vm1298_vm5, %vm1299_vm4 }
 0xc82   :  { %v1294_v58 = vmul.f32 %v2414_v2, %v1293_v3 }
 0xc84   :  { %v1295_v4 = vmul.f32 0.5, %v1294_v58 }
 0xc86   :  { %v1296_v5 = vsub.f32 1.5, %v1295_v4 }
 0xc87   :  { %v1563_v38 = vpop.permute.xlu0 %1562 }
 0xc88   :  { %v1297_v6 = vmul.f32 %v2414_v2, %v1296_v5 }
 0xc8a   :  { %v1301_v56 = vsel %vm1300_vm6, %v2414_v2, %v1297_v6 }
 0xc8b   :  { %v1303_v7 = vmul.f32 %v1301_v56, %v3133_v51 }
 0xc8d   :  { %v1308_v8 = vmul.f32 %v2358_v16, %v1303_v7 }
 0xc8f   :  { %2283 = vmatmul.msk.f32.gmra.mxu2 %vm228_vm2, %v1308_v8 }
 0xcba   :  { %v1437_v11 = vpop.f32.mrf.mxu0 }
 0xcbb   :  { %v1438_v12 = vadd.f32 %v2920_v9, %v1437_v11 }
 0xcbd   :  { %v1440_v14 = vsel %vm441_vm13, %v1438_v12, -inf }
 0xcbe   :  { %1441 = vmax.xlane.f32.xlu2 %v1440_v14 }
 0xcbf   :  { %v1548_v15 = vpop.f32.mrf.mxu1 }
 0xcc0   :  { %v1549_v17 = vadd.f32 %v2927_v13, %v1548_v15 }
 0xcc2   :  { %v1551_v18 = vsel %vm441_vm13, %v1549_v17, -inf }
 0xcc3   :  { %1552 = vmax.xlane.f32.xlu1 %v1551_v18 }
 0xcd0   :  { %v1372_v33 = vpop.f32.mrf.mxu3 }
 0xcd1   :  { %v1373_v47 = vadd.f32 %v1372_v33, %v2913_v55 }
 0xcd3   :  { %v1375_v36 = vsel %vm441_vm13, %v1373_v47, -inf }
 0xd12   :  { %v3154_v21 = vpop.f32.mrf.mxu2 }
 0xd13   :  { %1702 = vrot.lane.b32.xlu0 %v3154_v21, %s2486_s25 }
 0xd1b   :  { %1612 = vrot.lane.b32.xlu0 %v3120_v49, %s2493_s7 }
 0xd31   :  { %v1442_v24 = vpop.xlane.xlu2 %1441 }
 0xd32   :  { %v1443_v25 = vsub.f32 %v1438_v12, %v1442_v24 }
 0xd34   :  { %v1444_v9 = vmul.f32 1.442695, %v1443_v25 }
 0xd36   :  { %2415 = vpow2.f32 %v1444_v9  ;;  %v1553_v26 = vpop.xlane.xlu1 %1552 }
 0xd37   :  { %v1554_v27 = vsub.f32 %v1549_v17, %v1553_v26 }
 0xd39   :  { %v1555_v28 = vmul.f32 1.442695, %v1554_v27 }
 0xd3b   :  { %2417 = vpow2.f32 %v1555_v28 }
 0xd3c   :  { %v2416_v13 = vpop.eup %2415 }
 0xd3d   :  { %v1446_v29 = vsel %vm441_vm13, %v2416_v13, 0.0 }
 0xd3e   :  { %1447 = vadd.xlane.f32.xlu2 %v1446_v29 }
 0xd41   :  { %v2418_v30 = vpop.eup %2417 }
 0xd42   :  { %v1557_v31 = vsel %vm441_vm13, %v2418_v30, 0.0 }
 0xd43   :  { %1558 = vadd.xlane.f32.xlu1 %v1557_v31 }
 0xd4b   :  { %1376 = vmax.xlane.f32.xlu1 %v1375_v36 }
 0xd56   :  { %1451 = vrot.lane.b32.xlu2 %v3120_v49, %s2490_s18 }
 0xd5e   :  { %1614 = vrot.lane.b32.xlu2 %v3120_v49, %s2492_s1 }
 0xd85   :  { %v1703_v57 = vpop.permute.xlu0 %1702 }
 0xd8d   :  { %v1613_v62 = vpop.permute.xlu0 %1612 }
 0xdb1   :  { %v1448_v23 = vpop.xlane.xlu2 %1447 }
 0xdb2   :  { %2419 = vrcp.f32 %v1448_v23  ;;  %v3231_v23 = vld [vmem:[%s3346_s12 + $0x38] sm:$0xff] }
 0xdb6   :  { %v1559_v19 = vpop.xlane.xlu1 %1558 }
 0xdb7   :  { %2421 = vrcp.f32 %v1559_v19 }
 0xdb8   :  { %v2420_v32 = vpop.eup %2419 }
 0xdb9   :  { %v1450_v20 = vmul.f32 %v2420_v32, %v2416_v13  ;;  %v1452_v63 = vpop.permute.xlu2 %1451 }
 0xdba   :  { %1472 = vmatpush.msrb.mxu2 %v1452_v63 }
 0xdbb   :  { %2293 = vmatmul.msk.f32.vlgmr.msrb.gmra.mxu2 %vm441_vm13, %v1450_v20  ;;  %v2455_v20 = vld [vmem:[%s3337_s3 + $0x8] sm:$0xff] }
 0xdbc   :  { %1583 = vmatpush.msra.mxu2 %v1563_v38 }
 0xdbd   :  { %v2422_v39 = vpop.eup %2421 }
 0xdbe   :  { %v1377_v40 = vpop.xlane.xlu1 %1376  ;;  %v1561_v42 = vmul.f32 %v2422_v39, %v2418_v30  ;;  %1695 = vmatpush.msrb.mxu2 %v3231_v23 }
 0xdbf   :  { %v1378_v41 = vsub.f32 %v1373_v47, %v1377_v40 }
 0xdc1   :  { %v1379_v43 = vmul.f32 1.442695, %v1378_v41  ;;  %v1615_v22 = vpop.permute.xlu2 %1614  ;;  %v2456_v41 = vld [vmem:[%s3337_s3 + $0x10] sm:$0xff] }
 0xdc2   :  { %2300 = vmatpush.xpose.msk.msrb.mxu0 %vm441_vm13, %v1615_v22 }
 0xdc3   :  { %2423 = vpow2.f32 %v1379_v43  ;;  %2298 = vmatmul.msk.f32.vlgmr.msra.gmra.mxu2 %vm441_vm13, %v1561_v42 }
 0xdc9   :  { %v2424_v44 = vpop.eup %2423 }
 0xdca   :  { %v1381_v16 = vsel %vm441_vm13, %v2424_v44, 0.0 }
 0xdcb   :  { %1382 = vadd.xlane.f32.xlu1 %v1381_v16 }
 0xde4   :  { %1386 = vrot.lane.b32.xlu1 %v3120_v49, %s2489_s4 }
 0xdec   :  { %1739 = vrot.lane.b32.xlu1 %v3154_v21, %s2489_s4 }
 0xe3e   :  { %v1383_v45 = vpop.xlane.xlu1 %1382  ;;  %v1474_v54 = vpop.f32.mrf.mxu2 }
 0xe3f   :  { %2425 = vrcp.f32 %v1383_v45 }
 0xe45   :  { %v2426_v46 = vpop.eup %2425 }
 0xe46   :  { %v1385_v48 = vmul.f32 %v2426_v46, %v2424_v44  ;;  %v1585_v59 = vpop.f32.mrf.mxu2 }
 0xe56   :  { %v1387_v50 = vpop.permute.xlu1 %1386 }
 0xe57   :  { %1407 = vmatpush.msrb.mxu3 %v1387_v50 }
 0xe58   :  { %2290 = vmatmul.msk.f32.vlgmr.msrb.gmra.mxu3 %vm441_vm13, %v1385_v48 }
 0xe59   :  { %1495 = vmatpush.msra.mxu3 %v2285_v52 }
 0xe5b   :  { %1606 = vmatpush.msrb.mxu3 %v2286_v53 }
 0xe5e   :  { %v1740_v61 = vpop.permute.xlu1 %1739 }
 0xe60   :  { %2294 = vmatmul.msk.f32.vlgmr.msra.gmra.mxu3 %vm441_vm13, %v1474_v54 }
 0xe61   :  { %2304 = vmatpush.xpose.msk.msra.mxu3 %vm441_vm13, %v1703_v57 }
 0xe68   :  { %2299 = vmatmul.msk.f32.vlgmr.msrb.gmra.mxu3 %vm441_vm13, %v1585_v59 }
 0xe69   :  { %1848 = vmatpush.msrb.mxu3 %v2285_v52 }
 0xe70   :  { %2305 = vmatmul.msk.f32.vlgmr.msra.gmra.mxu3 %vm441_vm13, %v3154_v21 }
 0xe71   :  { %1959 = vmatpush.msra.mxu3 %v2286_v53 }
 0xedb   :  { %v1409_v60 = vpop.f32.mrf.mxu3 }
 0xedc   :  { %2295 = vmatmul.msk.f32.vlgmr.msra.gmra.mxu0 %vm441_vm13, %v1409_v60 }
 0xedd   :  { %1760 = vmatpush.msra.mxu0 %v1740_v61 }
 0xee3   :  { %v3192_v0 = vpop.f32.mrf.mxu3 }
 0xee4   :  { %2301 = vmatmul.msk.f32.vlgmr.msrb.gmra.mxu0 %vm441_vm13, %v1613_v62 }
 0xee5   :  { %1871 = vmatpush.msrb.mxu0 %v2284_v37 }
 0xeeb   :  { %v3195_v1 = vpop.f32.mrf.mxu3 }
 0xef3   :  { %v1725_v2 = vpop.f32.mrf.mxu3 }
 0xef4   :  { %v1726_v3 = vadd.f32 %v1725_v2, %v2913_v55 }
 0xef6   :  { %v1728_v58 = vsel %vm441_vm13, %v1726_v3, -inf }
 0xef7   :  { %1729 = vmax.xlane.f32.xlu2 %v1728_v58 }
 0xf59   :  { %v3199_v4 = vpop.f32.mrf.mxu0 }
 0xf5a   :  { %v1521_v45 = vadd.f32 %v3199_v4, %v3192_v0 }
 0xf5c   :  { %v1611_v52 = vadd.f32 %v3195_v1, %v1521_v45  ;;  %v2327_v45 = vld [vmem:[%s3349_s15 + $0x40] sm:$0xff] }
 0xf61   :  { %v1637_v5 = vpop.f32.mrf.mxu0 }
 0xf62   :  { %v1638_v6 = vadd.f32 %v2975_v10, %v1637_v5 }
 0xf64   :  { %v1640_v56 = vsel %vm441_vm13, %v1638_v6, -inf }
 0xf65   :  { %1641 = vmax.xlane.f32.xlu1 %v1640_v56 }
 0xf6a   :  { %v1730_v7 = vpop.xlane.xlu2 %1729 }
 0xf6b   :  { %v1731_v8 = vsub.f32 %v1726_v3, %v1730_v7 }
 0xf6d   :  { %v1732_v11 = vmul.f32 1.442695, %v1731_v8 }
 0xf6f   :  { %2427 = vpow2.f32 %v1732_v11 }
 0xf75   :  { %v2428_v12 = vpop.eup %2427 }
 0xf76   :  { %v1734_v14 = vsel %vm441_vm13, %v2428_v12, 0.0 }
 0xf77   :  { %1735 = vadd.xlane.f32.xlu0 %v1734_v14 }
 0xf7e   :  { %1765 = vrot.lane.b32.xlu1 %v3154_v21, %s2487_s5 }
 0xf8b   :  { %1651 = vrot.lane.b32.xlu0 %v3120_v49, %s2494_s2 }
 0xf93   :  { %1878 = vrot.lane.b32.xlu0 %v3154_v21, %s2484_s22 }
 0xf9b   :  { %1967 = vrot.lane.b32.xlu0 %v3154_v21, %s2492_s1  ;;  %s2496_s1 = smov 128  }
 0xfd8   :  { %v1642_v55 = vpop.xlane.xlu1 %1641 }
 0xfd9   :  { %v1643_v15 = vsub.f32 %v1638_v6, %v1642_v55 }
 0xfdb   :  { %v1644_v17 = vmul.f32 1.442695, %v1643_v15 }
 0xfdd   :  { %2429 = vpow2.f32 %v1644_v17 }
 0xfe3   :  { %v2430_v18 = vpop.eup %2429 }
 0xfe4   :  { %v1646_v24 = vsel %vm441_vm13, %v2430_v18, 0.0 }
 0xfe5   :  { %1647 = vadd.xlane.f32.xlu2 %v1646_v24 }
 0xfea   :  { %v1736_v25 = vpop.xlane.xlu0 %1735 }
 0xfeb   :  { %2431 = vrcp.f32 %v1736_v25 }
 0xff0   :  { %v1766_v33 = vpop.permute.xlu1 %1765 }
 0xff1   :  { %v2432_v9 = vpop.eup %2431 }
 0xff2   :  { %v1738_v26 = vmul.f32 %v2432_v9, %v2428_v12 }
 0xff4   :  { %2306 = vmatmul.msk.f32.vlgmr.msra.gmra.mxu0 %vm441_vm13, %v1738_v26 }
 0xffd   :  { %1767 = vrot.lane.b32.xlu2 %v3154_v21, %s2485_s0  ;;  %v1652_v49 = vpop.permute.xlu0 %1651 }
 0xffe   :  { %1672 = vmatpush.msra.mxu1 %v1652_v49  ;;  %v2324_v49 = vld [vmem:[%s3348_s14 + $0x38] sm:$0xff] }
0x1005   :  { %1876 = vrot.lane.b32.xlu2 %v3154_v21, %s2488_s8  ;;  %v1879_v27 = vpop.permute.xlu0 %1878 }
0x100d   :  { %1965 = vrot.lane.b32.xlu2 %v3154_v21, %s2493_s7  ;;  %v1968_v28 = vpop.permute.xlu0 %1967  ;;  %s2497_s7 = smov 8  }
0x100e   :  { %2316 = vmatpush.xpose.msk.msra.mxu0 %vm441_vm13, %v1968_v28 }
0x1058   :  { %v1648_v13 = vpop.xlane.xlu2 %1647 }
0x1059   :  { %2433 = vrcp.f32 %v1648_v13  ;;  %v2323_v13 = vld [vmem:[%s3348_s14 + $0x30] sm:$0xff] }
0x105f   :  { %v2434_v29 = vpop.eup %2433 }
0x1060   :  { %v1650_v30 = vmul.f32 %v2434_v29, %v2430_v18  ;;  %v1768_v31 = vpop.permute.xlu2 %1767  ;;  %v2322_v29 = vld [vmem:[%s3348_s14 + $0x28] sm:$0xff] }
0x1061   :  { %2307 = vmatpush.xpose.msk.msrb.mxu1 %vm441_vm13, %v1768_v31  ;;  %v2321_v31 = vld [vmem:[%s3348_s14 + $0x20] sm:$0xff] }
0x1062   :  { %2302 = vmatmul.msk.f32.vlgmr.msra.gmra.mxu1 %vm441_vm13, %v1650_v30 }
0x1065   :  { %2312 = vmatpush.xpose.msk.msra.mxu1 %vm441_vm13, %v1879_v27 }
0x1068   :  { %v1877_v47 = vpop.permute.xlu2 %1876 }
0x106a   :  { %2308 = vmatmul.msk.f32.vlgmr.msrb.gmra.mxu1 %vm441_vm13, %v1766_v33 }
0x1070   :  { %v1966_v37 = vpop.permute.xlu2 %1965 }
0x1071   :  { %v1762_v36 = vpop.f32.mrf.mxu0 }
0x1072   :  { %2311 = vmatmul.msk.f32.vlgmr.msrb.gmra.mxu0 %vm441_vm13, %v1762_v36  ;;  %2313 = vmatmul.msk.f32.vlgmr.msra.gmra.mxu1 %vm441_vm13, %v1877_v47 }
0x107a   :  { %2317 = vmatmul.msk.f32.vlgmr.msra.gmra.mxu0 %vm441_vm13, %v1966_v37 }
0x10df   :  { %v1674_v19 = vpop.f32.mrf.mxu1 }
0x10e0   :  { %2303 = vmatmul.msk.f32.vlgmr.msrb.gmra.mxu2 %vm441_vm13, %v1674_v19 }
0x10e7   :  { %v1790_v32 = vpop.f32.mrf.mxu1 }
0x10e8   :  { %v1791_v63 = vadd.f32 %v2455_v20, %v1790_v32  ;;  %v2359_v20 = vld [vmem:[%s3347_s13 + $0x1] ss:$0 sm:$0xff] }
0x10ea   :  { %v1793_v38 = vsel %vm441_vm13, %v1791_v63, -inf }
0x10eb   :  { %1794 = vmax.xlane.f32.xlu0 %v1793_v38 }
0x10ef   :  { %v3239_v39 = vpop.f32.mrf.mxu0  ;;  %v1901_v40 = vpop.f32.mrf.mxu1 }
0x10f0   :  { %v1902_v42 = vadd.f32 %v2456_v41, %v1901_v40  ;;  %v2334_v40 = vld [vmem:[%s3349_s15 + $0x78] sm:$0xff]  ;;  %v2333_v41 = vld [vmem:[%s3349_s15 + $0x70] sm:$0xff] }
0x10f1   :  { %2156 = vmatpush.msrb.mxu0 %v2334_v40 }
0x10f2   :  { %v1904_v43 = vsel %vm441_vm13, %v1902_v42, -inf }
0x10f3   :  { %1905 = vmax.xlane.f32.xlu1 %v1904_v43  ;;  %2157 = vmatpush.msrb.mxu0 %v2333_v41  ;;  %v2331_v43 = vld [vmem:[%s3349_s15 + $0x60] sm:$0xff] }
0x10f7   :  { %v1990_v22 = vpop.f32.mrf.mxu0 }
0x10f8   :  { %v1991_v44 = vadd.f32 %v2975_v10, %v1990_v22  ;;  %v2330_v22 = vld [vmem:[%s3349_s15 + $0x58] sm:$0xff] }
0x10fa   :  { %v1993_v16 = vsel %vm441_vm13, %v1991_v44, -inf }
0x10fb   :  { %1994 = vmax.xlane.f32.xlu2 %v1993_v16  ;;  %v2328_v16 = vld [vmem:[%s3349_s15 + $0x48] sm:$0xff] }
0x1113   :  { %1804 = vrot.lane.b32.xlu2 %v3154_v21, %s2490_s18 }
0x115e   :  { %v1795_v46 = vpop.xlane.xlu0 %1794 }
0x115f   :  { %v1796_v48 = vsub.f32 %v1791_v63, %v1795_v46 }
0x1161   :  { %v1797_v50 = vmul.f32 1.442695, %v1796_v48 }
0x1163   :  { %2435 = vpow2.f32 %v1797_v50  ;;  %v1697_v53 = vpop.f32.mrf.mxu2 }
0x1164   :  { %v1700_v54 = vadd.f32 %v1697_v53, %v1611_v52 }
0x1166   :  { %v3253_v57 = vadd.f32 %v1700_v54, %v3097_v35  ;;  %v1906_v10 = vpop.xlane.xlu1 %1905 }
0x1167   :  { %v1907_v59 = vsub.f32 %v1902_v42, %v1906_v10  ;;  %v2332_v42 = vld [vmem:[%s3349_s15 + $0x68] sm:$0xff] }
0x1168   :  { %v2058_v60 = vmul.f32 %v3253_v57, %v3253_v57  ;;  %2158 = vmatpush.msrb.mxu0 %v2332_v42 }
0x1169   :  { %v2436_v61 = vpop.eup %2435  ;;  %v1908_v62 = vmul.f32 1.442695, %v1907_v59 }
0x116a   :  { %v2060_v0 = vsel %vm228_vm2, %v2058_v60, 0.0  ;;  %v1799_v2 = vsel %vm441_vm13, %v2436_v61, 0.0  ;;  %2159 = vmatpush.msrb.mxu0 %v2331_v43 }
0x116b   :  { %2437 = vpow2.f32 %v1908_v62  ;;  %2061 = vadd.xlane.f32.xlu2 %v2060_v0  ;;  %1800 = vadd.xlane.f32.xlu0 %v1799_v2 }
0x116c   :  { %2160 = vmatpush.msrb.mxu0 %v2330_v22 }
0x116e   :  { %v1995_v1 = vpop.xlane.xlu2 %1994 }
0x116f   :  { %v1996_v3 = vsub.f32 %v1991_v44, %v1995_v1  ;;  %v2329_v44 = vld [vmem:[%s3349_s15 + $0x50] sm:$0xff] }
0x1170   :  { %2161 = vmatpush.msrb.mxu0 %v2329_v44 }
0x1171   :  { %v2438_v58 = vpop.eup %2437  ;;  %v1997_v4 = vmul.f32 1.442695, %v1996_v3 }
0x1172   :  { %v1910_v35 = vsel %vm441_vm13, %v2438_v58, 0.0  ;;  %2162 = vmatpush.msrb.mxu0 %v2328_v16 }
0x1173   :  { %2439 = vpow2.f32 %v1997_v4  ;;  %1911 = vadd.xlane.f32.xlu1 %v1910_v35 }
0x1174   :  { %2163 = vmatpush.msrb.mxu0 %v2327_v45 }
0x1176   :  { %v1805_v5 = vpop.permute.xlu2 %1804 }
0x1177   :  { %1825 = vmatpush.msra.mxu2 %v1805_v5 }
0x1179   :  { %v2440_v6 = vpop.eup %2439 }
0x117a   :  { %v1999_v56 = vsel %vm441_vm13, %v2440_v6, 0.0 }
0x117b   :  { %2000 = vadd.xlane.f32.xlu0 %v1999_v56 }
0x118c   :  { %1915 = vrot.lane.b32.xlu1 %v3154_v21, %s2491_s19  ;;  %s2221_s19 = sshll.u32 %s3351_s17, 4  ;;  %s2222_s19 = int_to_ptr.hbm [resolvable:$true] %s2221_s19 }
0x118f   :  { %2004 = vrot.lane.b32.xlu0 %v3154_v21, %s2494_s2 }
0x11de   :  { %v1801_v7 = vpop.xlane.xlu0 %1800  ;;  %v2062_v21 = vpop.xlane.xlu2 %2061 }
0x11df   :  { %2441 = vrcp.f32 %v1801_v7  ;;  %v2066_v9 = vmul.f32 %v2062_v21, %v2824_v34 }
0x11e1   :  { %v2068_v26 = vadd.f32 1e-06, %v2066_v9  ;;  %v2360_v9 = vld [vmem:[%s3350_s16] ss:$0 sm:$0xff]  ;;  %s2495_s16 = smov [#allocation2]  }
0x11e2   :  { %s2219_s12 = sshll.u32 %s2495_s16, 4  ;;  %s2220_s12 = int_to_ptr.vmem [resolvable:$true] %s2219_s12 }
0x11e3   :  { %vm2076_vm8 = vweird.f32 %v2068_v26 }
0x11e5   :  { %v2442_v8 = vpop.eup %2441 }
0x11e6   :  { %v1803_v11 = vmul.f32 %v2442_v8, %v2436_v61  ;;  %v1912_v12 = vpop.xlane.xlu1 %1911 }
0x11e7   :  { %2443 = vrcp.f32 %v1912_v12 }
0x11e8   :  { %2309 = vmatmul.msk.f32.vlgmr.msra.gmra.mxu2 %vm441_vm13, %v1803_v11 }
0x11ed   :  { %v2444_v55 = vpop.eup %2443 }
0x11ee   :  { %v2001_v14 = vpop.xlane.xlu0 %2000  ;;  %v1914_v17 = vmul.f32 %v2444_v55, %v2438_v58 }
0x11ef   :  { %2445 = vrcp.f32 %v2001_v14 }
0x11f0   :  { %2447 = vrsqrt.f32 %v2068_v26 }
0x11f5   :  { %v2446_v15 = vpop.eup %2445 }
0x11f6   :  { %v2003_v24 = vmul.f32 %v2446_v15, %v2440_v6  ;;  %v2448_v28 = vpop.eup %2447 }
0x11f7   :  { %v2071_v30 = vmul.f32 %v2448_v28, %v2068_v26  ;;  %vm2077_vm7 = vweird.f32 %v2448_v28 }
0x11f8   :  { %vm2078_vm9 = vmor %vm2076_vm8, %vm2077_vm7 }
0x11f9   :  { %v2072_v33 = vmul.f32 %v2448_v28, %v2071_v30 }
0x11fb   :  { %v2073_v47 = vmul.f32 0.5, %v2072_v33 }
0x11fd   :  { %v2074_v36 = vsub.f32 1.5, %v2073_v47 }
0x11fe   :  { %v1916_v18 = vpop.permute.xlu1 %1915 }
0x11ff   :  { %1936 = vmatpush.msrb.mxu2 %v1916_v18  ;;  %v2075_v37 = vmul.f32 %v2448_v28, %v2074_v36 }
0x1200   :  { %2314 = vmatmul.msk.f32.vlgmr.msrb.gmra.mxu2 %vm441_vm13, %v1914_v17 }
0x1201   :  { %v2005_v25 = vpop.permute.xlu0 %2004  ;;  %2048 = vmatpush.msra.mxu2 %v3231_v23  ;;  %v2079_v19 = vsel %vm2078_vm9, %v2448_v28, %v2075_v37 }
0x1202   :  { %2025 = vmatpush.msrb.mxu1 %v2005_v25  ;;  %v2090_v63 = vmul.f32 %v2079_v19, %v3253_v57 }
0x1203   :  { %2318 = vmatmul.msk.f32.vlgmr.msrb.gmra.mxu1 %vm441_vm13, %v2003_v24 }
0x1204   :  { %v2095_v38 = vmul.f32 %v2359_v20, %v2090_v63 }
0x126b   :  { %v1827_v27 = vpop.f32.mrf.mxu2 }
0x126c   :  { %2310 = vmatmul.msk.f32.vlgmr.msrb.gmra.mxu3 %vm441_vm13, %v1827_v27 }
0x126d   :  { %2120 = vmatpush.msrb.mxu3 %v2324_v49 }
0x126f   :  { %2121 = vmatpush.msrb.mxu3 %v2323_v13 }
0x1271   :  { %2122 = vmatpush.msrb.mxu3 %v2322_v29 }
0x1273   :  { %2123 = vmatpush.msrb.mxu3 %v2321_v31 }
0x1280   :  { %v2027_v23 = vpop.f32.mrf.mxu1 }
0x1281   :  { %2319 = vmatmul.msk.f32.vlgmr.msra.gmra.mxu2 %vm441_vm13, %v2027_v23 }
0x1283   :  { %v1938_v32 = vpop.f32.mrf.mxu2 }
0x1284   :  { %2315 = vmatmul.msk.f32.vlgmr.msra.gmra.mxu3 %vm441_vm13, %v1938_v32 }
0x128c   :  { %2325 = vmatmul.msk.f32.vlgmr.msrb.gmra.mxu3 %vm228_vm2, %v2095_v38 }
0x12ef   :  { %v1850_v46 = vpop.f32.mrf.mxu3 }
0x12f0   :  { %v1874_v48 = vadd.f32 %v3239_v39, %v1850_v46 }
0x1304   :  { %v2050_v53 = vpop.f32.mrf.mxu2 }
0x1307   :  { %v1961_v50 = vpop.f32.mrf.mxu3 }
0x1308   :  { %v1964_v52 = vadd.f32 %v1961_v50, %v1874_v48 }
0x130a   :  { %v2053_v54 = vadd.f32 %v2050_v53, %v1964_v52 }
0x130c   :  { %v2055_v10 = vadd.f32 %v2053_v54, %v3133_v51 }
0x130e   :  { %v2059_v59 = vmul.f32 %v2055_v10, %v2055_v10 }
0x130f   :  { %v2125_v60 = vpop.f32.mrf.mxu3 }
0x1310   :  { %v2131_v61 = vmax.f32 %v2125_v60, 0.0  ;;  %v2063_v62 = vsel %vm228_vm2, %v2059_v59, 0.0 }
0x1311   :  { %2064 = vadd.xlane.f32.xlu0 %v2063_v62 }
0x1312   :  { %2335 = vmatmul.msk.f32.vlgmr.msrb.gmra.mxu0 %vm1236_vm15, %v2131_v61 }
0x1384   :  { %v2065_v0 = vpop.xlane.xlu0 %2064 }
0x1385   :  { %v2067_v2 = vmul.f32 %v2065_v0, %v2824_v34 }
0x1387   :  { %v2069_v1 = vadd.f32 1e-06, %v2067_v2 }
0x1389   :  { %2449 = vrsqrt.f32 %v2069_v1  ;;  %vm2086_vm10 = vweird.f32 %v2069_v1 }
0x138f   :  { %v2450_v39 = vpop.eup %2449  ;;  %v2165_v3 = vpop.f32.mrf.mxu0 }
0x1390   :  { %v2081_v58 = vmul.f32 %v2450_v39, %v2069_v1  ;;  %v2171_v4 = vadd.f32 %v2165_v3, %v3253_v57  ;;  %vm2087_vm13 = vweird.f32 %v2450_v39 }
0x1391   :  { %vm2088_vm11 = vmor %vm2086_vm10, %vm2087_vm13 }
0x1392   :  { %v2082_v35 = vmul.f32 %v2450_v39, %v2081_v58  ;;  %v2174_v51 = vmul.f32 %v2171_v4, %v2171_v4 }
0x1394   :  { %v2083_v5 = vmul.f32 0.5, %v2082_v35  ;;  %v2176_v6 = vsel %vm228_vm2, %v2174_v51, 0.0 }
0x1395   :  { %2177 = vadd.xlane.f32.xlu1 %v2176_v6 }
0x1396   :  { %v2084_v56 = vsub.f32 1.5, %v2083_v5 }
0x1398   :  { %v2085_v7 = vmul.f32 %v2450_v39, %v2084_v56 }
0x139a   :  { %v2089_v8 = vsel %vm2088_vm11, %v2450_v39, %v2085_v7 }
0x139b   :  { %v2091_v11 = vmul.f32 %v2089_v8, %v2055_v10 }
0x139d   :  { %v2096_v12 = vmul.f32 %v2359_v20, %v2091_v11 }
0x139f   :  { %2326 = vmatmul.msk.f32.gmra.mxu3 %vm228_vm2, %v2096_v12 }
0x1408   :  { %v2178_v14 = vpop.xlane.xlu1 %2177 }
0x1409   :  { %v2182_v55 = vmul.f32 %v2178_v14, %v2824_v34 }
0x140b   :  { %v2184_v57 = vadd.f32 1e-06, %v2182_v55 }
0x140d   :  { %2451 = vrsqrt.f32 %v2184_v57  ;;  %vm2192_vm14 = vweird.f32 %v2184_v57 }
0x1413   :  { %v2452_v15 = vpop.eup %2451 }
0x1414   :  { %v2187_v17 = vmul.f32 %v2452_v15, %v2184_v57  ;;  %vm2193_vm12 = vweird.f32 %v2452_v15 }
0x1415   :  { %vm2194_vm0 = vmor %vm2192_vm14, %vm2193_vm12 }
0x1416   :  { %v2188_v18 = vmul.f32 %v2452_v15, %v2187_v17 }
0x1418   :  { %v2189_v24 = vmul.f32 0.5, %v2188_v18 }
0x141a   :  { %v2190_v25 = vsub.f32 1.5, %v2189_v24 }
0x141c   :  { %v2191_v21 = vmul.f32 %v2452_v15, %v2190_v25 }
0x141e   :  { %v2195_v26 = vsel %vm2194_vm0, %v2452_v15, %v2191_v21 }
0x141f   :  { %v2206_v49 = vmul.f32 %v2195_v26, %v2171_v4 }
0x1421   :  { %v2211_v27 = vmul.f32 %v2360_v9, %v2206_v49 }
0x1422   :  { %v2128_v28 = vpop.f32.mrf.mxu3 }
0x1423   :  { %2213 = vst.msk [vmem:[#allocation2] sm:$0xff] %vm228_vm2, %v2211_v27  ;;  %v2132_v13 = vmax.f32 %v2128_v28, 0.0 }
0x1425   :  { %2336 = vmatmul.msk.f32.gmra.mxu0 %vm1236_vm15, %v2132_v13 }
0x14a2   :  { %v2168_v29 = vpop.f32.mrf.mxu0 }
0x14a3   :  { %v2172_v30 = vadd.f32 %v2168_v29, %v2055_v10 }
0x14a5   :  { %v2175_v31 = vmul.f32 %v2172_v30, %v2172_v30 }
0x14a7   :  { %v2179_v33 = vsel %vm228_vm2, %v2175_v31, 0.0 }
0x14a8   :  { %2180 = vadd.xlane.f32.xlu2 %v2179_v33 }
0x151b   :  { %v2181_v47 = vpop.xlane.xlu2 %2180 }
0x151c   :  { %v2183_v36 = vmul.f32 %v2181_v47, %v2824_v34 }
0x151e   :  { %v2185_v37 = vadd.f32 1e-06, %v2183_v36 }
0x1520   :  { %2453 = vrsqrt.f32 %v2185_v37  ;;  %vm2202_vm3 = vweird.f32 %v2185_v37 }
0x1526   :  { %v2454_v23 = vpop.eup %2453 }
0x1527   :  { %v2197_v19 = vmul.f32 %v2454_v23, %v2185_v37  ;;  %vm2203_vm1 = vweird.f32 %v2454_v23 }
0x1528   :  { %vm2204_vm15 = vmor %vm2202_vm3, %vm2203_vm1 }
0x1529   :  { %v2198_v32 = vmul.f32 %v2454_v23, %v2197_v19 }
0x152b   :  { %v2199_v20 = vmul.f32 0.5, %v2198_v32 }
0x152d   :  { %v2200_v63 = vsub.f32 1.5, %v2199_v20 }
0x152f   :  { %v2201_v38 = vmul.f32 %v2454_v23, %v2200_v63 }
0x1531   :  { %v2205_v40 = vsel %vm2204_vm15, %v2454_v23, %v2201_v38 }
0x1532   :  { %v2207_v41 = vmul.f32 %v2205_v40, %v2172_v30 }
0x1534   :  { %v2212_v34 = vmul.f32 %v2360_v9, %v2207_v41 }
0x1536   :  { %2214 = vst.msk [vmem:[#allocation2 + $0x8] sm:$0xff] %vm228_vm2, %v2212_v34 }
0x1537   :  { %2227 = dma.vmem_to_hbm [thread:$0]  %s2220_s12, 256, %s2222_s19, [#allocation3], %s2496_s1, %s2496_s1, %s2497_s7  }
0x1538   :  { %2481 = dma.done.wait [#allocation3], 256  }
0x1539   :  { %2482 = vsyncadd [#allocation3], 4294967040 }
0x153a   :  { %2232 = vsyncpa [#allocation3], 1 }

</bundles_post_ra>
